<compile_context>
chip_gen: v5e
topology: v5e:2x2
jax: 0.10.0
libtpu: 0.0.40
codegen_flags: <defaults>
</compile_context>

<pallas_src>
import functools

import jax
import jax.numpy as jnp
from jax.experimental import pallas as pl
from jax.experimental.pallas import tpu as pltpu


# ------------------------------- helpers -------------------------------------
def _round_up(x, m):
    return (x + m - 1) // m * m


def _padded_block_bytes(shape, dtype):
    """Block footprint in VMEM with (sublane, lane) layout padding."""
    it = jnp.dtype(dtype).itemsize
    sub = max(8, 32 // it)                 # 8 for f32, 16 for bf16, 32 for 8-bit
    dims = list(shape)
    if len(dims) >= 1:
        dims[-1] = _round_up(dims[-1], 128)
    if len(dims) >= 2:
        dims[-2] = _round_up(dims[-2], sub)
    n = 1
    for d in dims:
        n *= d
    return n * it


def _vmem_capacity_bytes():
    try:
        info = pltpu.get_tpu_info()
        cap = getattr(info, "vmem_capacity_bytes", None)
        if cap:
            return int(cap)
    except Exception:
        pass
    return 128 << 20  # v5e/v6e physical VMEM


def _pick_toc(OC_pad):
    # 256 matches v6e/v7x's 256-wide MXU; otherwise 128.
    # TODO(synk): force 128 on v5e (128-wide MXU, single vst slot).
    if OC_pad >= 256 and OC_pad % 256 == 0:
        return 256
    return 128


def _pick_toh(OH, OW, TOC):
    """Largest divisor TOH of OH with TOH*OW under the accumulator budget,
    preferring TOH*OW a multiple of 8 (sublane-aligned M tile)."""
    target_m = max(128, (128 * 1024) // (TOC * 4))   # ~32 vregs of f32 acc
    best, best_aligned = 1, None
    for t in range(1, OH + 1):
        if OH % t:
            continue
        m = t * OW
        if m <= target_m:
            best = t
            if m % 8 == 0:
                best_aligned = t
    return best_aligned if best_aligned is not None else best


# ----------------------------- Pallas kernel ---------------------------------
def _conv_direct_kernel(x_ref, w_ref, b_ref, o_ref, *, KH, KW, C, sh, sw,
                        fold_kw):
    # x_ref: (H_pad, W_pad, C)   whole padded NHWC image of this batch index
    # w_ref: (KH, KW*C, TOC)     conv weight, OC tile on lanes, K = kw*C + c
    # b_ref: (1, TOC)            f32 bias tile (zero-padded)
    # o_ref: (TOH, OW, TOC)      output rows for this (n, oc-tile, row-tile)
    TOH, OW, TOC = o_ref.shape

    t = pl.program_id(2)                       # row-tile axis (innermost)
    row0 = t * (TOH * sh)
    if (TOH * sh) % 8 == 0:
        row0 = pl.multiple_of(row0, 8)

    acc = jnp.zeros((TOH * OW, TOC), jnp.float32)
    for kh in range(KH):
        rows = (pl.ds(row0 + kh, TOH) if sh == 1
                else pl.ds(row0 + kh, TOH, stride=sh))
        if fold_kw:
            # VMEM-local im2col of one kernel row: one matmul with K = KW*C.
            wins = []
            for kw in range(KW):
                cols = (pl.ds(kw, OW) if sw == 1
                        else pl.ds(kw, OW, stride=sw))
                wins.append(x_ref[rows, cols, :])           # (TOH, OW, C)
            x2d = jnp.concatenate(wins, axis=-1).reshape(TOH * OW, KW * C)
            acc = acc + jnp.dot(x2d, w_ref[kh],
                                preferred_element_type=jnp.float32)
        else:
            # C already >= 128: K=C saturates the MXU; one matmul per tap.
            for kw in range(KW):
                cols = (pl.ds(kw, OW) if sw == 1
                        else pl.ds(kw, OW, stride=sw))
                x2d = x_ref[rows, cols, :].reshape(TOH * OW, C)
                acc = acc + jnp.dot(x2d, w_ref[kh, pl.ds(kw * C, C), :],
                                    preferred_element_type=jnp.float32)

    acc = acc + b_ref[...].astype(jnp.float32)              # (1, TOC) broadcast
    o_ref[...] = acc.reshape(TOH, OW, TOC).astype(o_ref.dtype)


def _conv_direct(x_nhwc, w, b, *, OH, OW, sh, sw, out_dtype, oc):
    N, Hp, Wp, C = x_nhwc.shape
    KH, KWC, OC_pad = w.shape
    KW = KWC // C

    TOC = _pick_toc(OC_pad)
    TOH = _pick_toh(OH, OW, TOC)
    # Row-tile axis innermost: the weight/bias blocks (indexed by j only) stay
    # resident in VMEM across all row tiles of a given (n, j).
    grid = (N, OC_pad // TOC, OH // TOH)

    fold_kw = (KW > 1) and (C < 128)
    kernel = functools.partial(_conv_direct_kernel, KH=KH, KW=KW, C=C,
                               sh=sh, sw=sw, fold_kw=fold_kw)

    # --- VMEM budget on real (sublane, lane)-padded block footprints ---------
    x_blk = _padded_block_bytes((Hp, Wp, C), x_nhwc.dtype)
    w_blk = _padded_block_bytes((KH, KWC, TOC), w.dtype)
    b_blk = _padded_block_bytes((1, TOC), b.dtype)
    o_blk = _padded_block_bytes((TOH, OW, TOC), out_dtype)

    # Large batch-resident image: single-buffer it (only re-fetched when n
    # changes, so the exposed DMA is one per batch element).
    single_buffer_x = x_blk > (8 << 20)
    if single_buffer_x:
        x_spec = pl.BlockSpec((None, Hp, Wp, C), lambda n, j, t: (n, 0, 0, 0),
                              pipeline_mode=pl.Buffered(1))
    else:
        x_spec = pl.BlockSpec((None, Hp, Wp, C), lambda n, j, t: (n, 0, 0, 0))

    need = ((1 if single_buffer_x else 2) * x_blk
            + 2 * (w_blk + b_blk + o_blk))
    cap = _vmem_capacity_bytes()
    headroom_cap = cap * 3 // 4            # leave ~25% for Mosaic scratch
    vmem_limit = int(min(headroom_cap, max(32 << 20, need + (16 << 20))))
    # TODO(synk): if `need` exceeds `headroom_cap` (huge images) split the
    #             image into overlapping H slabs via manual DMA double-buffer.

    x_it = jnp.dtype(x_nhwc.dtype).itemsize
    flops = 2 * N * OH * OW * KH * KW * C * oc           # real OC, not padded
    bytes_accessed = (x_nhwc.size * x_it
                      + w.size * jnp.dtype(w.dtype).itemsize
                      + b.size * 4
                      + N * OH * OW * OC_pad * jnp.dtype(out_dtype).itemsize)

    return pl.pallas_call(
        kernel,
        out_shape=jax.ShapeDtypeStruct((N, OH, OW, OC_pad), out_dtype),
        grid_spec=pltpu.PrefetchScalarGridSpec(
            num_scalar_prefetch=0,
            grid=grid,
            in_specs=[
                x_spec,
                pl.BlockSpec((KH, KWC, TOC), lambda n, j, t: (0, 0, j)),
                pl.BlockSpec((1, TOC), lambda n, j, t: (0, j)),
            ],
            out_specs=pl.BlockSpec((None, TOH, OW, TOC),
                                   lambda n, j, t: (n, t, 0, j)),
        ),
        compiler_params=pltpu.CompilerParams(
            # Row-tile axis "arbitrary": its image index_map depends only on n,
            # so core-sharding it would duplicate whole-image DMAs (v7x).
            dimension_semantics=("parallel", "parallel", "arbitrary"),
            vmem_limit_bytes=vmem_limit),
        cost_estimate=pl.CostEstimate(flops=flops, transcendentals=0,
                                      bytes_accessed=bytes_accessed),
    )(x_nhwc, w, b)


# ------------------------------ Conv2D module --------------------------------
class Conv2D:
    """JAX/Pallas equivalent of the PyTorch Conv2D module (NCHW boundary)."""

    def __init__(self, in_channels, out_channels, kernel_size, stride=1,
                 padding=0, *, key=None, dtype=jnp.float32):
        self.in_channels = in_channels
        self.out_channels = out_channels
        self.kernel_size = (kernel_size, kernel_size) if isinstance(
            kernel_size, int) else tuple(kernel_size)
        self.stride = (stride, stride) if isinstance(stride, int) else tuple(stride)
        self.padding = (padding, padding) if isinstance(padding, int) else tuple(padding)

        if key is None:
            key = jax.random.PRNGKey(0)
        kw_key, kb_key = jax.random.split(key)
        kh, kw = self.kernel_size
        fan_in = in_channels * kh * kw
        bound = 1.0 / (fan_in ** 0.5)  # matches PyTorch's default uniform bound
        self.weight = jax.random.uniform(
            kw_key, (out_channels, in_channels, kh, kw), dtype,
            minval=-bound, maxval=bound)
        self.bias = jax.random.uniform(
            kb_key, (out_channels,), dtype, minval=-bound, maxval=bound)

    def __call__(self, x):
        return conv2d_forward(x, self.weight, self.bias,
                              stride=self.stride, padding=self.padding)


@functools.partial(jax.jit, static_argnames=("stride", "padding", "compute_dtype"))
def conv2d_forward(x, weight, bias, *, stride, padding,
                   compute_dtype=jnp.float32):
    # x: (N, C, H, W)   weight: (OC, C, KH, KW)   bias: (OC,)
    # compute_dtype=jnp.bfloat16 on v6e/v7x for MXU-native throughput (the
    # accumulation, bias add and output stay f32); f32 default == exact parity.
    N, C, H, W = x.shape
    OC, _, KH, KW = weight.shape
    sh, sw = stride
    ph, pw = padding
    OH = (H + 2 * ph - KH) // sh + 1
    OW = (W + 2 * pw - KW) // sw + 1

    # NCHW -> NHWC (channels on lanes) + spatial zero pad: one cheap pass,
    # no KH*KW im2col materialization in HBM.
    x_nhwc = jnp.transpose(x, (0, 2, 3, 1)).astype(compute_dtype)
    if ph or pw:
        x_nhwc = jnp.pad(x_nhwc, ((0, 0), (ph, ph), (pw, pw), (0, 0)))

    # weight (OC, C, KH, KW) -> (KH, KW*C, OC_pad): OC on lanes, zero-padded to
    # a multiple of 128 (lane-dense unmasked output stores); K = kw*C + c so
    # the kernel can fold KW into the MXU contraction dimension.
    OC_pad = _round_up(OC, 128)
    w = jnp.transpose(weight, (2, 3, 1, 0)).astype(compute_dtype)
    b = bias.astype(jnp.float32).reshape(1, OC)
    if OC_pad != OC:
        w = jnp.pad(w, ((0, 0), (0, 0), (0, 0), (0, OC_pad - OC)))
        b = jnp.pad(b, ((0, 0), (0, OC_pad - OC)))
    w = w.reshape(KH, KW * C, OC_pad)

    out_nhwc = _conv_direct(x_nhwc, w, b, OH=OH, OW=OW, sh=sh, sw=sw,
                            out_dtype=x.dtype, oc=OC)

    # Drop the OC padding and return to NCHW (XLA fuses slice + transpose).
    # TODO(synk): keep the surrounding model NHWC end-to-end to drop both
    #             transposes.
    return jnp.transpose(out_nhwc[..., :OC], (0, 3, 1, 2))


# ---------------------------------- main --------------------------------------
if __name__ == "__main__":
    key = jax.random.PRNGKey(0)
    k_x, k_params = jax.random.split(key)

    # small shapes consistent with the module: batch=2, C_in=4, spatial=16
    N, C, H, W = 2, 4, 16, 16
    OC, K, STRIDE, PAD = 8, 3, 1, 1

    x = jax.random.normal(k_x, (N, C, H, W), jnp.float32)
    conv = Conv2D(C, OC, K, stride=STRIDE, padding=PAD, key=k_params)

    y = conv(x)
    y = jax.block_until_ready(y)

    # sanity check vs XLA's native conv
    y_ref = jax.lax.conv_general_dilated(
        x, conv.weight, window_strides=(STRIDE, STRIDE),
        padding=[(PAD, PAD), (PAD, PAD)],
        dimension_numbers=("NCHW", "OIHW", "NCHW"),
    ) + conv.bias.reshape(1, OC, 1, 1)
    assert y.shape == (N, OC, H, W)
    assert jnp.allclose(y, y_ref, atol=1e-4, rtol=1e-4)

    print("KERNEL_OK")
</pallas_src>

<mosaic_0001>
module attributes {stable_mosaic.version = 11 : i64} {
  func.func @_conv_direct_kernel(%arg0: i32, %arg1: i32, %arg2: i32, %arg3: memref<1x18x18x4xf32, #tpu.memory_space<vmem>>, %arg4: memref<3x12x128xf32, #tpu.memory_space<vmem>>, %arg5: memref<1x128xf32, #tpu.memory_space<vmem>>, %arg6: memref<1x16x16x128xf32, #tpu.memory_space<vmem>>) attributes {dimension_semantics = [#tpu.dimension_semantics<parallel>, #tpu.dimension_semantics<parallel>, #tpu.dimension_semantics<arbitrary>], iteration_bounds = array<i64: 2, 1, 1>, scalar_prefetch = 0 : i64, scratch_operands = 0 : i64, tpu.core_type = #tpu.core_type<tc>, window_params = [{transform_indices = @transform_0, window_bounds = array<i64: 1, 18, 18, 4>}, {transform_indices = @transform_1, window_bounds = array<i64: 3, 12, 128>}, {transform_indices = @transform_2, window_bounds = array<i64: 1, 128>}, {transform_indices = @transform_3, window_bounds = array<i64: 1, 16, 16, 128>}]} {
    %c16_i32 = arith.constant 16 : i32
    %0 = arith.muli %arg2, %c16_i32 : i32
    %1 = tpu.assume_multiple %0, 8 : i32
    %cst = arith.constant 0.000000e+00 : f32
    %2 = vector.broadcast %cst : f32 to vector<256x128xf32>
    %c0_i32 = arith.constant 0 : i32
    %3 = arith.addi %1, %c0_i32 : i32
    %c0 = arith.constant 0 : index
    %4 = arith.index_cast %3 : i32 to index
    %c0_0 = arith.constant 0 : index
    %c0_1 = arith.constant 0 : index
    %5 = vector.load %arg3[%c0, %4, %c0_0, %c0_1] : memref<1x18x18x4xf32, #tpu.memory_space<vmem>>, vector<1x16x16x4xf32>
    %6 = vector.shape_cast %5 : vector<1x16x16x4xf32> to vector<16x16x4xf32>
    %c0_2 = arith.constant 0 : index
    %7 = arith.index_cast %3 : i32 to index
    %c1 = arith.constant 1 : index
    %c0_3 = arith.constant 0 : index
    %8 = vector.load %arg3[%c0_2, %7, %c1, %c0_3] : memref<1x18x18x4xf32, #tpu.memory_space<vmem>>, vector<1x16x16x4xf32>
    %9 = vector.shape_cast %8 : vector<1x16x16x4xf32> to vector<16x16x4xf32>
    %c0_4 = arith.constant 0 : index
    %10 = arith.index_cast %3 : i32 to index
    %c2 = arith.constant 2 : index
    %c0_5 = arith.constant 0 : index
    %11 = vector.load %arg3[%c0_4, %10, %c2, %c0_5] : memref<1x18x18x4xf32, #tpu.memory_space<vmem>>, vector<1x16x16x4xf32>
    %12 = vector.shape_cast %11 : vector<1x16x16x4xf32> to vector<16x16x4xf32>
    %13 = tpu.concatenate %6, %9, %12 in 2 : vector<16x16x4xf32>, vector<16x16x4xf32>, vector<16x16x4xf32> -> vector<16x16x12xf32>
    %14 = vector.shape_cast %13 : vector<16x16x12xf32> to vector<256x12xf32>
    %c0_6 = arith.constant 0 : index
    %c0_7 = arith.constant 0 : index
    %c0_8 = arith.constant 0 : index
    %15 = vector.load %arg4[%c0_6, %c0_7, %c0_8] : memref<3x12x128xf32, #tpu.memory_space<vmem>>, vector<1x12x128xf32>
    %16 = vector.shape_cast %15 : vector<1x12x128xf32> to vector<12x128xf32>
    %cst_9 = arith.constant dense<0.000000e+00> : vector<256x128xf32>
    %17 = tpu.matmul %14, %16, %cst_9 {dimension_numbers = #tpu.dot_dimension_numbers<[1], [0], [0], [1], [0, 0, 1, 1], [], []>} : vector<256x12xf32>, vector<12x128xf32>, vector<256x128xf32> -> vector<256x128xf32>
    %18 = arith.addf %2, %17 : vector<256x128xf32>
    %c1_i32 = arith.constant 1 : i32
    %19 = arith.addi %1, %c1_i32 : i32
    %c0_10 = arith.constant 0 : index
    %20 = arith.index_cast %19 : i32 to index
    %c0_11 = arith.constant 0 : index
    %c0_12 = arith.constant 0 : index
    %21 = vector.load %arg3[%c0_10, %20, %c0_11, %c0_12] : memref<1x18x18x4xf32, #tpu.memory_space<vmem>>, vector<1x16x16x4xf32>
    %22 = vector.shape_cast %21 : vector<1x16x16x4xf32> to vector<16x16x4xf32>
    %c0_13 = arith.constant 0 : index
    %23 = arith.index_cast %19 : i32 to index
    %c1_14 = arith.constant 1 : index
    %c0_15 = arith.constant 0 : index
    %24 = vector.load %arg3[%c0_13, %23, %c1_14, %c0_15] : memref<1x18x18x4xf32, #tpu.memory_space<vmem>>, vector<1x16x16x4xf32>
    %25 = vector.shape_cast %24 : vector<1x16x16x4xf32> to vector<16x16x4xf32>
    %c0_16 = arith.constant 0 : index
    %26 = arith.index_cast %19 : i32 to index
    %c2_17 = arith.constant 2 : index
    %c0_18 = arith.constant 0 : index
    %27 = vector.load %arg3[%c0_16, %26, %c2_17, %c0_18] : memref<1x18x18x4xf32, #tpu.memory_space<vmem>>, vector<1x16x16x4xf32>
    %28 = vector.shape_cast %27 : vector<1x16x16x4xf32> to vector<16x16x4xf32>
    %29 = tpu.concatenate %22, %25, %28 in 2 : vector<16x16x4xf32>, vector<16x16x4xf32>, vector<16x16x4xf32> -> vector<16x16x12xf32>
    %30 = vector.shape_cast %29 : vector<16x16x12xf32> to vector<256x12xf32>
    %c1_19 = arith.constant 1 : index
    %c0_20 = arith.constant 0 : index
    %c0_21 = arith.constant 0 : index
    %31 = vector.load %arg4[%c1_19, %c0_20, %c0_21] : memref<3x12x128xf32, #tpu.memory_space<vmem>>, vector<1x12x128xf32>
    %32 = vector.shape_cast %31 : vector<1x12x128xf32> to vector<12x128xf32>
    %cst_22 = arith.constant dense<0.000000e+00> : vector<256x128xf32>
    %33 = tpu.matmul %30, %32, %cst_22 {dimension_numbers = #tpu.dot_dimension_numbers<[1], [0], [0], [1], [0, 0, 1, 1], [], []>} : vector<256x12xf32>, vector<12x128xf32>, vector<256x128xf32> -> vector<256x128xf32>
    %34 = arith.addf %18, %33 : vector<256x128xf32>
    %c2_i32 = arith.constant 2 : i32
    %35 = arith.addi %1, %c2_i32 : i32
    %c0_23 = arith.constant 0 : index
    %36 = arith.index_cast %35 : i32 to index
    %c0_24 = arith.constant 0 : index
    %c0_25 = arith.constant 0 : index
    %37 = vector.load %arg3[%c0_23, %36, %c0_24, %c0_25] : memref<1x18x18x4xf32, #tpu.memory_space<vmem>>, vector<1x16x16x4xf32>
    %38 = vector.shape_cast %37 : vector<1x16x16x4xf32> to vector<16x16x4xf32>
    %c0_26 = arith.constant 0 : index
    %39 = arith.index_cast %35 : i32 to index
    %c1_27 = arith.constant 1 : index
    %c0_28 = arith.constant 0 : index
    %40 = vector.load %arg3[%c0_26, %39, %c1_27, %c0_28] : memref<1x18x18x4xf32, #tpu.memory_space<vmem>>, vector<1x16x16x4xf32>
    %41 = vector.shape_cast %40 : vector<1x16x16x4xf32> to vector<16x16x4xf32>
    %c0_29 = arith.constant 0 : index
    %42 = arith.index_cast %35 : i32 to index
    %c2_30 = arith.constant 2 : index
    %c0_31 = arith.constant 0 : index
    %43 = vector.load %arg3[%c0_29, %42, %c2_30, %c0_31] : memref<1x18x18x4xf32, #tpu.memory_space<vmem>>, vector<1x16x16x4xf32>
    %44 = vector.shape_cast %43 : vector<1x16x16x4xf32> to vector<16x16x4xf32>
    %45 = tpu.concatenate %38, %41, %44 in 2 : vector<16x16x4xf32>, vector<16x16x4xf32>, vector<16x16x4xf32> -> vector<16x16x12xf32>
    %46 = vector.shape_cast %45 : vector<16x16x12xf32> to vector<256x12xf32>
    %c2_32 = arith.constant 2 : index
    %c0_33 = arith.constant 0 : index
    %c0_34 = arith.constant 0 : index
    %47 = vector.load %arg4[%c2_32, %c0_33, %c0_34] : memref<3x12x128xf32, #tpu.memory_space<vmem>>, vector<1x12x128xf32>
    %48 = vector.shape_cast %47 : vector<1x12x128xf32> to vector<12x128xf32>
    %cst_35 = arith.constant dense<0.000000e+00> : vector<256x128xf32>
    %49 = tpu.matmul %46, %48, %cst_35 {dimension_numbers = #tpu.dot_dimension_numbers<[1], [0], [0], [1], [0, 0, 1, 1], [], []>} : vector<256x12xf32>, vector<12x128xf32>, vector<256x128xf32> -> vector<256x128xf32>
    %50 = arith.addf %34, %49 : vector<256x128xf32>
    %c0_36 = arith.constant 0 : index
    %c0_37 = arith.constant 0 : index
    %51 = vector.load %arg5[%c0_36, %c0_37] : memref<1x128xf32, #tpu.memory_space<vmem>>, vector<1x128xf32>
    %52 = vector.broadcast %51 : vector<1x128xf32> to vector<256x128xf32>
    %53 = arith.addf %50, %52 : vector<256x128xf32>
    %54 = vector.shape_cast %53 : vector<256x128xf32> to vector<16x16x128xf32>
    %c0_38 = arith.constant 0 : index
    %c0_39 = arith.constant 0 : index
    %c0_40 = arith.constant 0 : index
    %c0_41 = arith.constant 0 : index
    %55 = vector.load %arg6[%c0_38, %c0_39, %c0_40, %c0_41] : memref<1x16x16x128xf32, #tpu.memory_space<vmem>>, vector<1x16x16x128xf32>
    %56 = vector.shape_cast %55 : vector<1x16x16x128xf32> to vector<16x16x128xf32>
    %57 = vector.shape_cast %54 : vector<16x16x128xf32> to vector<1x16x16x128xf32>
    tpu.vector_store %arg6[%c0_38, %c0_39, %c0_40, %c0_41], %57 {strides = array<i32>} : memref<1x16x16x128xf32, #tpu.memory_space<vmem>>, vector<1x16x16x128xf32>,
    return
  }
  func.func @transform_0(%arg0: i32, %arg1: i32, %arg2: i32) -> (i32, i32, i32, i32) {
    %c0_i32 = arith.constant 0 : i32
    %c0_i32_0 = arith.constant 0 : i32
    %c0_i32_1 = arith.constant 0 : i32
    %c0_i32_2 = arith.constant 0 : i32
    return %arg0, %c0_i32, %c0_i32_0, %c0_i32_1 : i32, i32, i32, i32
  }
  func.func @transform_1(%arg0: i32, %arg1: i32, %arg2: i32) -> (i32, i32, i32) {
    %c0_i32 = arith.constant 0 : i32
    %c0_i32_0 = arith.constant 0 : i32
    %c0_i32_1 = arith.constant 0 : i32
    return %c0_i32, %c0_i32_0, %arg1 : i32, i32, i32
  }
  func.func @transform_2(%arg0: i32, %arg1: i32, %arg2: i32) -> (i32, i32) {
    %c0_i32 = arith.constant 0 : i32
    %c0_i32_0 = arith.constant 0 : i32
    return %c0_i32, %arg1 : i32, i32
  }
  func.func @transform_3(%arg0: i32, %arg1: i32, %arg2: i32) -> (i32, i32, i32, i32) {
    %c0_i32 = arith.constant 0 : i32
    %c0_i32_0 = arith.constant 0 : i32
    return %arg0, %arg2, %c0_i32, %arg1 : i32, i32, i32, i32
  }
}

</mosaic_0001>

<bundles_post_ra>
// kernel: conv2d_forward.1
= control target key start
LH: loop header
LB: loop body
LE: loop exit
PB: predicated region body
PF: predicated region fallthrough
CT: control target
= control target key end

     0   :  { %s2772_s12 = smov 0   ;;  %s2774_s13 = smov 0   ;;  %s4224_s0 = inlined_call_operand.vmem [shape: f32[2,18,18,4], index: 0, kind: input, shape index: {}]   ;;  %s4225_s1 = inlined_call_operand.vmem [shape: f32[3,12,128], index: 1, kind: input, shape index: {}]   ;;  %s4226_s2 = inlined_call_operand.vmem [shape: f32[1,128], index: 2, kind: input, shape index: {}]   ;;  %s4227_s3 = inlined_call_operand.vmem [shape: f32[2,16,16,128], index: 3, kind: output, shape index: {}]  }
   0x1   :  { %s2776_s14 = smov 0  }
   0x2 LB: > { %s32_s15 = sadd.s32 1, %s2744_s13  ;;  %p2390_p0 = scmp.ge.s32.totalorder %s2748_s14, 1  ;;  %s2748_s14 = sphi %s2776_s14, %s13_s14   ;;  %s2744_s13 = sphi %s2774_s13, %s4302_s13   ;;  %s2740_s12 = sphi %s2772_s12, %s4301_s12  }
   0x3   : > { %p34_p1 = scmp.ge.s32.totalorder %s32_s15, 2  ;;  %p177_p2 = scmp.lt.s32.totalorder %s2748_s14, 3 }
   0x5   : > { %s4304_s15 = smov (%p34_p1, %s32_s15), 0  ;;  %p178_p3 = pnand %p2390_p0, %p177_p2 }
   0x7   : > { %181 = sbr.rel (%p178_p3) target bundleno = 777 (0x309), region = 32 }
   0xc   : > { %p216_p4 = scmp.lt.s32.totalorder %s2740_s12, 1  ;;  %s2750_s20 = smov 4   ;;  %vm1184_vm0 = vcmask 1043456   ;;  %vm597_vm1 = vcmask 31744   ;;  %vm630_vm2 = vcmask 64512   ;;  %vm1087_vm3 = vcmask 97280  }
   0xd   : > { %s2751_s21 = smov 8  }
   0xe   : > { %s4306_s12 = smov (!%p216_p4, %s2740_s12), 1 }
   0xf   : > { %s2698_s16 = smul.u32 432, %s4306_s12  ;;  %s2691_s7 = sshll.u32 %s4306_s12, 8 }
  0x10   : > { %s3868_s12 = scalar_lea.vmem %s4227_s3, %s2691_s7 }
  0x11   : > { %s2796_s19 = scalar_lea.vmem %s4224_s0, %s2698_s16 }
  0x12   : > { %v2799_v0 = vld [vmem:[%s2796_s19 + $0x31] sm:$0xff]  ;;  %v2802_v1 = vld [vmem:[%s2796_s19 + $0x19] sm:$0xff]  ;;  %v277_v2 = vld [vmem:[%s2796_s19 + $0x1] sm:$0xff] }
  0x13   : > { %381 = vrot.lane.b32.xlu2 %v2799_v0, %s2750_s20  ;;  %377 = vrot.lane.b32.xlu1 %v2802_v1, %s2750_s20  ;;  %v2811_v3 = vld [vmem:[%s2796_s19 + $0x39] sm:$0xff]  ;;  %v2814_v4 = vld [vmem:[%s2796_s19 + $0x21] sm:$0xff] }
  0x14   : > { %373 = vrot.lane.b32.xlu0 %v277_v2, %s2750_s20  ;;  %v278_v5 = vld [vmem:[%s2796_s19 + $0x9] sm:$0xff]  ;;  %v2823_v6 = vld [vmem:[%s2796_s19 + $0x61] sm:$0xff]  ;;  %v2826_v7 = vld [vmem:[%s2796_s19 + $0x51] sm:$0xff] }
  0x15   : > { %v2829_v8 = vld [vmem:[%s2796_s19 + $0x49] sm:$0xff]  ;;  %v2838_v9 = vld [vmem:[%s2796_s19 + $0x81] sm:$0xff]  ;;  %v2841_v10 = vld [vmem:[%s2796_s19 + $0x79] sm:$0xff] }
  0x16   : > { %v2844_v11 = vld [vmem:[%s2796_s19 + $0x69] sm:$0xff]  ;;  %v2856_v13 = vld [vmem:[%s2796_s19 + $0x99] sm:$0xff]  ;;  %v2859_v14 = vld [vmem:[%s2796_s19 + $0x91] sm:$0xff] }
  0x17   : > { %v2853_v12 = vld [vmem:[%s2796_s19 + $0xa9] sm:$0xff]  ;;  %v293_v16 = vld [vmem:[%s2796_s19 + $0xc1] sm:$0xff]  ;;  %v2872_v17 = vld [vmem:[%s2796_s19 + $0xb1] sm:$0xff] }
  0x18   : > { %v2868_v15 = vld [vmem:[%s2796_s19 + $0xc9] sm:$0xff]  ;;  %v297_v18 = vld [vmem:[%s2796_s19 + $0xf1] sm:$0xff]  ;;  %v296_v19 = vld [vmem:[%s2796_s19 + $0xe1] sm:$0xff] }
  0x19   : > { %4243 = vst [vmem:[#allocation2_spill] sm:$0xff] %v2868_v15  ;;  %v2882_v20 = vld [vmem:[%s2796_s19 + $0xd9] sm:$0xff]  ;;  %v300_v21 = vld [vmem:[%s2796_s19 + $0x111] sm:$0xff]  ;;  %v299_v22 = vld [vmem:[%s2796_s19 + $0x109] sm:$0xff] }
  0x1a   : > { %4244 = vst [vmem:[#allocation3_spill] sm:$0xff] %v2882_v20  ;;  %v298_v23 = vld [vmem:[%s2796_s19 + $0xf9] sm:$0xff]  ;;  %v302_v25 = vld [vmem:[%s2796_s19 + $0x129] sm:$0xff]  ;;  %v301_v26 = vld [vmem:[%s2796_s19 + $0x121] sm:$0xff] }
  0x1b   : > { %383 = vrot.lane.b32.xlu2 %v2811_v3, %s2750_s20  ;;  %379 = vrot.lane.b32.xlu1 %v2814_v4, %s2750_s20  ;;  %v2895_v24 = vld [vmem:[%s2796_s19 + $0x139] sm:$0xff]  ;;  %v2907_v28 = vld [vmem:[%s2796_s19 + $0x151] sm:$0xff] }
  0x1c   : > { %375 = vrot.lane.b32.xlu0 %v278_v5, %s2750_s20  ;;  %v2904_v27 = vld [vmem:[%s2796_s19 + $0x159] sm:$0xff]  ;;  %v2910_v29 = vld [vmem:[%s2796_s19 + $0x141] sm:$0xff]  ;;  %v2920_v31 = vld [vmem:[%s2796_s19 + $0x171] sm:$0xff] }
  0x1d   : > { %v309_v30 = vld [vmem:[%s2796_s19 + $0x2] sm:$0xff]  ;;  %v2934_v34 = vld [vmem:[%s2796_s19 + $0x1a] sm:$0xff]  ;;  %v310_v35 = vld [vmem:[%s2796_s19 + $0xa] sm:$0xff] }
  0x1e   : > { %v2923_v32 = vld [vmem:[%s2796_s19 + $0x169] sm:$0xff]  ;;  %v2948_v38 = vld [vmem:[%s2796_s19 + $0x3a] sm:$0xff]  ;;  %v2951_v39 = vld [vmem:[%s2796_s19 + $0x32] sm:$0xff] }
  0x1f   : > { %v2931_v33 = vld [vmem:[%s2796_s19 + $0x22] sm:$0xff]  ;;  %v2945_v37 = vld [vmem:[%s2796_s19 + $0x4a] sm:$0xff]  ;;  %v2968_v43 = vld [vmem:[%s2796_s19 + $0x52] sm:$0xff] }
  0x20   : > { %v2962_v41 = vld [vmem:[%s2796_s19 + $0x6a] sm:$0xff]  ;;  %v2965_v42 = vld [vmem:[%s2796_s19 + $0x62] sm:$0xff]  ;;  %v2979_v45 = vld [vmem:[%s2796_s19 + $0x92] sm:$0xff] }
  0x21   : > { %v2982_v46 = vld [vmem:[%s2796_s19 + $0x82] sm:$0xff]  ;;  %v2985_v47 = vld [vmem:[%s2796_s19 + $0x7a] sm:$0xff]  ;;  %v3000_v51 = vld [vmem:[%s2796_s19 + $0xb2] sm:$0xff] }
  0x22   : > { %4245 = vst [vmem:[#allocation4_spill] sm:$0xff] %v3000_v51  ;;  %v3003_v52 = vld [vmem:[%s2796_s19 + $0xaa] sm:$0xff]  ;;  %v3006_v53 = vld [vmem:[%s2796_s19 + $0x9a] sm:$0xff]  ;;  %v3027_v59 = vld [vmem:[%s2796_s19 + $0xc2] sm:$0xff] }
  0x23   : > { %389 = vrot.lane.b32.xlu2 %v2823_v6, %s2750_s20  ;;  %387 = vrot.lane.b32.xlu1 %v2826_v7, %s2750_s20  ;;  %v3021_v57 = vld [vmem:[%s2796_s19 + $0xda] sm:$0xff]  ;;  %v3024_v58 = vld [vmem:[%s2796_s19 + $0xca] sm:$0xff]  ;;  %4248 = vst [vmem:[#allocation7_spill] sm:$0xff] %v3027_v59 }
  0x24   : > { %385 = vrot.lane.b32.xlu0 %v2829_v8, %s2750_s20  ;;  %4246 = vst [vmem:[#allocation5_spill] sm:$0xff] %v3021_v57  ;;  %v330_v63 = vld [vmem:[%s2796_s19 + $0xfa] sm:$0xff]  ;;  %v3043_v2 = vld [vmem:[%s2796_s19 + $0xf2] sm:$0xff]  ;;  %v3046_v5 = vld [vmem:[%s2796_s19 + $0xe2] sm:$0xff] }
  0x25   : > { %4247 = vst [vmem:[#allocation6_spill] sm:$0xff] %v3024_v58 }
  0x26   : > { %4250 = vst [vmem:[#allocation9_spill] sm:$0xff] %v3043_v2 }
  0x27   : > { %4251 = vst [vmem:[#allocation10_spill] sm:$0xff] %v3046_v5 }
  0x2b   : > { %395 = vrot.lane.b32.xlu2 %v2838_v9, %s2750_s20  ;;  %393 = vrot.lane.b32.xlu1 %v2841_v10, %s2750_s20 }
  0x2c   : > { %391 = vrot.lane.b32.xlu0 %v2844_v11, %s2750_s20 }
  0x33   : > { %401 = vrot.lane.b32.xlu2 %v2853_v12, %s2750_s20  ;;  %399 = vrot.lane.b32.xlu1 %v2856_v13, %s2750_s20 }
  0x34   : > { %397 = vrot.lane.b32.xlu0 %v2859_v14, %s2750_s20 }
  0x3b   : > { %407 = vrot.lane.b32.xlu2 %v2868_v15, %s2750_s20  ;;  %405 = vrot.lane.b32.xlu1 %v293_v16, %s2750_s20  ;;  %v3056_v16 = vld [vmem:[%s4225_s1 + $0x8] sm:$0xf] }
  0x3c   : > { %403 = vrot.lane.b32.xlu0 %v2872_v17, %s2750_s20  ;;  %2525 = vmatpush.msk.msra.mxu1 %vm1184_vm0, %v3056_v16 }
  0x43   : > { %413 = vrot.lane.b32.xlu2 %v297_v18, %s2750_s20  ;;  %411 = vrot.lane.b32.xlu1 %v296_v19, %s2750_s20 }
  0x44   : > { %409 = vrot.lane.b32.xlu0 %v2882_v20, %s2750_s20  ;;  %v3100_v20 = vld [vmem:[%s2796_s19 + $0x15a] sm:$0xff] }
  0x4b   : > { %419 = vrot.lane.b32.xlu2 %v300_v21, %s2750_s20  ;;  %417 = vrot.lane.b32.xlu1 %v299_v22, %s2750_s20  ;;  %v3069_v22 = vld [vmem:[%s4225_s1] sm:$0xff] }
  0x4c   : > { %415 = vrot.lane.b32.xlu0 %v298_v23, %s2750_s20  ;;  %1415 = vmatpush.msra.mxu1 %v3069_v22  ;;  %v333_v23 = vld [vmem:[%s2796_s19 + $0x122] sm:$0xff] }
  0x53   : > { %425 = vrot.lane.b32.xlu2 %v2895_v24, %s2750_s20  ;;  %423 = vrot.lane.b32.xlu1 %v302_v25, %s2750_s20  ;;  %v332_v25 = vld [vmem:[%s2796_s19 + $0x112] sm:$0xff] }
  0x54   : > { %421 = vrot.lane.b32.xlu0 %v301_v26, %s2750_s20  ;;  %v331_v26 = vld [vmem:[%s2796_s19 + $0x10a] sm:$0xff] }
  0x5b   : > { %431 = vrot.lane.b32.xlu2 %v2904_v27, %s2750_s20  ;;  %429 = vrot.lane.b32.xlu1 %v2907_v28, %s2750_s20 }
  0x5c   : > { %427 = vrot.lane.b32.xlu0 %v2910_v29, %s2750_s20 }
  0x63   : > { %501 = vrot.lane.b32.xlu2 %v309_v30, %s2751_s21  ;;  %435 = vrot.lane.b32.xlu1 %v2920_v31, %s2750_s20 }
  0x64   : > { %433 = vrot.lane.b32.xlu0 %v2923_v32, %s2750_s20 }
  0x6b   : > { %507 = vrot.lane.b32.xlu2 %v2931_v33, %s2751_s21  ;;  %505 = vrot.lane.b32.xlu1 %v2934_v34, %s2751_s21 }
  0x6c   : > { %503 = vrot.lane.b32.xlu0 %v310_v35, %s2751_s21 }
  0x6d   : > { %v2942_v36 = vpop.permute.xlu2 %381 }
  0x73   : > { %513 = vrot.lane.b32.xlu2 %v2945_v37, %s2751_s21  ;;  %511 = vrot.lane.b32.xlu1 %v2948_v38, %s2751_s21 }
  0x74   : > { %509 = vrot.lane.b32.xlu0 %v2951_v39, %s2751_s21 }
  0x75   : > { %v2959_v40 = vpop.permute.xlu2 %383 }
  0x7b   : > { %519 = vrot.lane.b32.xlu2 %v2962_v41, %s2751_s21  ;;  %517 = vrot.lane.b32.xlu1 %v2965_v42, %s2751_s21 }
  0x7c   : > { %515 = vrot.lane.b32.xlu0 %v2968_v43, %s2751_s21 }
  0x7d   : > { %v2976_v44 = vpop.permute.xlu2 %389 }
  0x83   : > { %525 = vrot.lane.b32.xlu2 %v2979_v45, %s2751_s21  ;;  %523 = vrot.lane.b32.xlu1 %v2982_v46, %s2751_s21 }
  0x84   : > { %521 = vrot.lane.b32.xlu0 %v2985_v47, %s2751_s21 }
  0x85   : > { %v2993_v48 = vpop.permute.xlu2 %395  ;;  %v2995_v49 = vpop.permute.xlu1 %377 }
  0x86   : > { %v2997_v50 = vpop.permute.xlu0 %373 }
  0x8b   : > { %531 = vrot.lane.b32.xlu2 %v3000_v51, %s2751_s21  ;;  %529 = vrot.lane.b32.xlu1 %v3003_v52, %s2751_s21 }
  0x8c   : > { %527 = vrot.lane.b32.xlu0 %v3006_v53, %s2751_s21 }
  0x8d   : > { %v3014_v54 = vpop.permute.xlu2 %401  ;;  %v3016_v55 = vpop.permute.xlu1 %379 }
  0x8e   : > { %v3018_v56 = vpop.permute.xlu0 %375 }
  0x93   : > { %537 = vrot.lane.b32.xlu2 %v3021_v57, %s2751_s21  ;;  %535 = vrot.lane.b32.xlu1 %v3024_v58, %s2751_s21  ;;  %v334_v57 = vld [vmem:[%s2796_s19 + $0x12a] sm:$0xff]  ;;  %v3118_v58 = vld [vmem:[%s2796_s19 + $0x172] sm:$0xff] }
  0x94   : > { %533 = vrot.lane.b32.xlu0 %v3027_v59, %s2751_s21  ;;  %v245_v59 = vld [vmem:[%s2796_s19] sm:$0xff] }
  0x95   : > { %v3035_v60 = vpop.permute.xlu2 %407  ;;  %v3037_v61 = vpop.permute.xlu1 %387 }
  0x96   : > { %4249 = vst [vmem:[#allocation8_spill] sm:$0xff] %v3035_v60  ;;  %v3039_v62 = vpop.permute.xlu0 %385 }
  0x9b   : > { %543 = vrot.lane.b32.xlu2 %v330_v63, %s2751_s21  ;;  %541 = vrot.lane.b32.xlu1 %v3043_v2, %s2751_s21  ;;  %v336_v2 = vld [vmem:[%s2796_s19 + $0x142] sm:$0xff] }
  0x9c   : > { %539 = vrot.lane.b32.xlu0 %v3046_v5, %s2751_s21  ;;  %v335_v5 = vld [vmem:[%s2796_s19 + $0x13a] sm:$0xff] }
  0x9d   : > { %v3058_v18 = vpop.permute.xlu2 %413  ;;  %v3060_v19 = vpop.permute.xlu1 %393 }
  0x9e   : > { %4252 = vst [vmem:[#allocation11_spill] sm:$0xff] %v3058_v18  ;;  %v3064_v21 = vpop.permute.xlu0 %391  ;;  %v3103_v18 = vld [vmem:[%s2796_s19 + $0x152] sm:$0xff] }
  0xa3   : > { %549 = vrot.lane.b32.xlu2 %v333_v23, %s2751_s21  ;;  %547 = vrot.lane.b32.xlu1 %v332_v25, %s2751_s21 }
  0xa4   : > { %545 = vrot.lane.b32.xlu0 %v331_v26, %s2751_s21 }
  0xa5   : > { %v3078_v30 = vpop.permute.xlu2 %419  ;;  %v3080_v35 = vpop.permute.xlu1 %399 }
  0xa6   : > { %4253 = vst [vmem:[#allocation12_spill] sm:$0xff] %v3078_v30  ;;  %v3082_v63 = vpop.permute.xlu0 %397  ;;  %v3097_v30 = vld [vmem:[%s2796_s19 + $0x16a] sm:$0xff] }
  0xab   : > { %555 = vrot.lane.b32.xlu2 %v336_v2, %s2751_s21  ;;  %553 = vrot.lane.b32.xlu1 %v335_v5, %s2751_s21 }
  0xac   : > { %551 = vrot.lane.b32.xlu0 %v334_v57, %s2751_s21 }
  0xad   : > { %v3090_v23 = vpop.permute.xlu2 %425  ;;  %v3092_v25 = vpop.permute.xlu1 %405 }
  0xae   : > { %4254 = vst [vmem:[#allocation13_spill] sm:$0xff] %v3090_v23  ;;  %v3094_v26 = vpop.permute.xlu0 %403 }
  0xb3   : > { %561 = vrot.lane.b32.xlu2 %v3097_v30, %s2751_s21  ;;  %559 = vrot.lane.b32.xlu1 %v3100_v20, %s2751_s21 }
  0xb4   : > { %557 = vrot.lane.b32.xlu0 %v3103_v18, %s2751_s21 }
  0xb5   : > { %v3111_v57 = vpop.permute.xlu2 %431  ;;  %v3113_v23 = vpop.permute.xlu1 %411 }
  0xb6   : > { %4255 = vst [vmem:[#allocation14_spill] sm:$0xff] %v3111_v57  ;;  %v3115_v15 = vpop.permute.xlu0 %409  ;;  %v598_v57 = vsel %vm597_vm1, %v245_v59, %v2997_v50 }
  0xb7   : > { %4256 = vst [vmem:[#allocation15_spill] sm:$0xff] %v3113_v23 }
  0xb8   : > { %4257 = vst [vmem:[#allocation16_spill] sm:$0xff] %v3115_v15 }
  0xbb   : > { %798 = vrot.lane.b32.xlu2 %v2814_v4, %s2750_s20  ;;  %796 = vrot.lane.b32.xlu1 %v2802_v1, %s2750_s20 }
  0xbc   : > { %563 = vrot.lane.b32.xlu0 %v3118_v58, %s2751_s21 }
  0xbd   : > { %v502_v23 = vpop.permute.xlu2 %501  ;;  %v3129_v15 = vpop.permute.xlu1 %417 }
  0xbe   : > { %4258 = vst [vmem:[#allocation17_spill] sm:$0xff] %v3129_v15  ;;  %v3131_v60 = vpop.permute.xlu0 %415  ;;  %v631_v51 = vsel %vm630_vm2, %v598_v57, %v502_v23  ;;  %v246_v15 = vld [vmem:[%s2796_s19 + $0x8] sm:$0xff] }
  0xbf   : > { %2526 = vmatmul.msk.f32.vlgmr.msra.gmra.mxu1 %vm1087_vm3, %v631_v51 }
  0xc3   : > { %804 = vrot.lane.b32.xlu2 %v2829_v8, %s2750_s20  ;;  %802 = vrot.lane.b32.xlu1 %v2811_v3, %s2750_s20 }
  0xc4   : > { %800 = vrot.lane.b32.xlu0 %v2799_v0, %s2750_s20 }
  0xc5   : > { %v508_v1 = vpop.permute.xlu2 %507  ;;  %v3141_v4 = vpop.permute.xlu1 %423 }
  0xc6   : > { %4259 = vst [vmem:[#allocation18_spill] sm:$0xff] %v3141_v4  ;;  %v3143_v50 = vpop.permute.xlu0 %421 }
  0xc7   : > { %4260 = vst [vmem:[#allocation19_spill] sm:$0xff] %v3143_v50 }
  0xcb   : > { %810 = vrot.lane.b32.xlu2 %v2844_v11, %s2750_s20  ;;  %808 = vrot.lane.b32.xlu1 %v2823_v6, %s2750_s20 }
  0xcc   : > { %806 = vrot.lane.b32.xlu0 %v2826_v7, %s2750_s20 }
  0xcd   : > { %v3151_v51 = vpop.permute.xlu2 %513  ;;  %v3153_v59 = vpop.permute.xlu1 %429 }
  0xce   : > { %4261 = vst [vmem:[#allocation20_spill] sm:$0xff] %v3153_v59  ;;  %v3155_v23 = vpop.permute.xlu0 %427  ;;  %v3182_v59 = vld [vmem:[%s2796_s19 + $0x18] sm:$0xff] }
  0xd3   : > { %972 = vrot.lane.b32.xlu2 %v335_v5, %s2751_s21  ;;  %1644 = vrot.lane.b32.xlu1 %v2799_v0, %s2750_s20  ;;  %v599_v5 = vsel %vm597_vm1, %v246_v15, %v3018_v56  ;;  %v600_v15 = vsel %vm597_vm1, %v3182_v59, %v2995_v49 }
  0xd4   : > { %844 = vrot.lane.b32.xlu0 %v2895_v24, %s2750_s20 }
  0xd5   : > { %v3162_v57 = vpop.permute.xlu2 %519  ;;  %v3164_v4 = vpop.permute.xlu1 %435 }
  0xd6   : > { %4262 = vst [vmem:[#allocation21_spill] sm:$0xff] %v3164_v4  ;;  %v3166_v50 = vpop.permute.xlu0 %433 }
  0xd7   : > { %4263 = vst [vmem:[#allocation22_spill] sm:$0xff] %v3166_v50 }
  0xdb   : > { %846 = vrot.lane.b32.xlu2 %v2910_v29, %s2750_s20  ;;  %924 = vrot.lane.b32.xlu1 %v2934_v34, %s2751_s21 }
  0xdc   : > { %1772 = vrot.lane.b32.xlu0 %v2951_v39, %s2751_s21 }
  0xdd   : > { %v3175_v0 = vpop.permute.xlu2 %525  ;;  %v506_v24 = vpop.permute.xlu1 %505 }
  0xde   : > { %v504_v4 = vpop.permute.xlu0 %503 }
  0xdf   : > { %v632_v50 = vsel %vm630_vm2, %v599_v5, %v504_v4  ;;  %v633_v4 = vsel %vm630_vm2, %v600_v15, %v506_v24 }
  0xe0   : > { %2527 = vmatmul.msk.f32.gmra.mxu1 %vm1087_vm3, %v632_v50  ;;  %v3197_v50 = vld [vmem:[%s2796_s19 + $0x20] sm:$0xff] }
  0xe3   : > { %1774 = vrot.lane.b32.xlu2 %v2948_v38, %s2751_s21  ;;  %974 = vrot.lane.b32.xlu1 %v336_v2, %s2751_s21  ;;  %v601_v2 = vsel %vm597_vm1, %v3197_v50, %v3016_v55 }
  0xe4   : > { %1646 = vrot.lane.b32.xlu0 %v2811_v3, %s2750_s20  ;;  %v634_v5 = vsel %vm630_vm2, %v601_v2, %v508_v1 }
  0xe5   : > { %v3189_v29 = vpop.permute.xlu2 %531  ;;  %v512_v34 = vpop.permute.xlu1 %511 }
  0xe6   : > { %v510_v56 = vpop.permute.xlu0 %509 }
  0xe8   : > { %2528 = vmatmul.msk.f32.gmra.mxu1 %vm1087_vm3, %v633_v4 }
  0xeb   : > { %1648 = vrot.lane.b32.xlu2 %v2829_v8, %s2750_s20  ;;  %848 = vrot.lane.b32.xlu1 %v2907_v28, %s2750_s20  ;;  %v3213_v8 = vld [vmem:[%s2796_s19 + $0x30] sm:$0xff] }
  0xec   : > { %926 = vrot.lane.b32.xlu0 %v2931_v33, %s2751_s21  ;;  %v602_v55 = vsel %vm597_vm1, %v3213_v8, %v2942_v36 }
  0xed   : > { %v3205_v3 = vpop.permute.xlu2 %537  ;;  %v518_v49 = vpop.permute.xlu1 %517  ;;  %v635_v15 = vsel %vm630_vm2, %v602_v55, %v510_v56  ;;  %v3253_v55 = vld [vmem:[%s2796_s19 + $0x48] sm:$0xff] }
  0xee   : > { %v516_v24 = vpop.permute.xlu0 %515 }
  0xf0   : > { %2529 = vmatmul.msk.f32.gmra.mxu1 %vm1087_vm3, %v634_v5 }
  0xf3   : > { %928 = vrot.lane.b32.xlu2 %v2951_v39, %s2751_s21  ;;  %1776 = vrot.lane.b32.xlu1 %v2945_v37, %s2751_s21  ;;  %v3233_v39 = vld [vmem:[%s2796_s19 + $0x38] sm:$0xff] }
  0xf4   : > { %976 = vrot.lane.b32.xlu0 %v3103_v18, %s2751_s21  ;;  %v603_v56 = vsel %vm597_vm1, %v3233_v39, %v2959_v40  ;;  %v604_v40 = vsel %vm597_vm1, %v3253_v55, %v3039_v62 }
  0xf5   : > { %v3221_v28 = vpop.permute.xlu2 %543  ;;  %v3223_v33 = vpop.permute.xlu1 %523  ;;  %v636_v5 = vsel %vm630_vm2, %v603_v56, %v512_v34 }
  0xf6   : > { %v3228_v1 = vpop.permute.xlu0 %521 }
  0xf8   : > { %2530 = vmatmul.msk.f32.gmra.mxu1 %vm1087_vm3, %v635_v15 }
  0xfb   : > { %978 = vrot.lane.b32.xlu2 %v3100_v20, %s2751_s21  ;;  %1650 = vrot.lane.b32.xlu1 %v2826_v7, %s2750_s20 }
  0xfc   : > { %850 = vrot.lane.b32.xlu0 %v2904_v27, %s2750_s20 }
  0xfd   : > { %v3241_v4 = vpop.permute.xlu2 %549  ;;  %v3243_v36 = vpop.permute.xlu1 %529 }
  0xfe   : > { %v3248_v2 = vpop.permute.xlu0 %527 }
 0x100   : > { %2531 = vmatmul.msk.f32.gmra.mxu1 %vm1087_vm3, %v636_v5 }
 0x103   : > { %852 = vrot.lane.b32.xlu2 %v2923_v32, %s2750_s20  ;;  %930 = vrot.lane.b32.xlu1 %v2948_v38, %s2751_s21  ;;  %v637_v32 = vsel %vm630_vm2, %v604_v40, %v3151_v51  ;;  %v3274_v38 = vld [vmem:[%s2796_s19 + $0x50] sm:$0xff]  ;;  %v3294_v40 = vld [vmem:[%s2796_s19 + $0x60] sm:$0xff] }
 0x104   : > { %1778 = vrot.lane.b32.xlu0 %v2968_v43, %s2751_s21  ;;  %v605_v51 = vsel %vm597_vm1, %v3274_v38, %v3037_v61 }
 0x105   : > { %v3261_v7 = vpop.permute.xlu2 %555  ;;  %v3263_v27 = vpop.permute.xlu1 %535  ;;  %v638_v5 = vsel %vm630_vm2, %v605_v51, %v516_v24  ;;  %v606_v24 = vsel %vm597_vm1, %v3294_v40, %v2976_v44 }
 0x106   : > { %v3268_v34 = vpop.permute.xlu0 %533 }
 0x108   : > { %2532 = vmatmul.msk.f32.gmra.mxu1 %vm1087_vm3, %v637_v32 }
 0x10b   : > { %1780 = vrot.lane.b32.xlu2 %v2965_v42, %s2751_s21  ;;  %980 = vrot.lane.b32.xlu1 %v3097_v30, %s2751_s21 }
 0x10c   : > { %1652 = vrot.lane.b32.xlu0 %v2823_v6, %s2750_s20 }
 0x10d   : > { %v3282_v15 = vpop.permute.xlu2 %561  ;;  %v3284_v62 = vpop.permute.xlu1 %541 }
 0x10e   : > { %4264 = vst [vmem:[#allocation23_spill] sm:$0xff] %v3282_v15  ;;  %v3289_v56 = vpop.permute.xlu0 %539 }
 0x110   : > { %2533 = vmatmul.msk.f32.gmra.mxu1 %vm1087_vm3, %v638_v5 }
 0x113   : > { %1654 = vrot.lane.b32.xlu2 %v2844_v11, %s2750_s20  ;;  %854 = vrot.lane.b32.xlu1 %v2920_v31, %s2750_s20  ;;  %v639_v11 = vsel %vm630_vm2, %v606_v24, %v518_v49  ;;  %v3314_v31 = vld [vmem:[%s2796_s19 + $0x68] sm:$0xff] }
 0x114   : > { %932 = vrot.lane.b32.xlu0 %v2945_v37, %s2751_s21  ;;  %v607_v49 = vsel %vm597_vm1, %v3314_v31, %v3064_v21  ;;  %v3338_v24 = vld [vmem:[%s2796_s19 + $0x181] sm:$0xff]  ;;  %v2491_v21 = vld [vmem:[%s4225_s1 + $0x18] sm:$0xf] }
 0x115   : > { %v3302_v6 = vpop.permute.xlu2 %798  ;;  %v3304_v61 = vpop.permute.xlu1 %547  ;;  %v640_v5 = vsel %vm630_vm2, %v607_v49, %v3162_v57  ;;  %4266 = vst [vmem:[#allocation25_spill] sm:$0xff] %v3338_v24  ;;  %2692 = vmatpush.msk.msra.mxu3 %vm1184_vm0, %v2491_v21  ;;  %2492 = vmatpush.msk.msra.mxu0 %vm1184_vm0, %v2491_v21  ;;  %v2654_v21 = vld [vmem:[%s4225_s1 + $0x20] sm:$0xff] }
 0x116   : > { %v3309_v32 = vpop.permute.xlu0 %545 }
 0x118   : > { %2534 = vmatmul.msk.f32.gmra.mxu1 %vm1087_vm3, %v639_v11 }
 0x11b   : > { %934 = vrot.lane.b32.xlu2 %v2968_v43, %s2751_s21  ;;  %1782 = vrot.lane.b32.xlu1 %v2962_v41, %s2751_s21  ;;  %v3335_v43 = vld [vmem:[%s2796_s19 + $0x182] sm:$0xff] }
 0x11c   : > { %982 = vrot.lane.b32.xlu0 %v3118_v58, %s2751_s21  ;;  %4265 = vst [vmem:[#allocation24_spill] sm:$0xff] %v3335_v43  ;;  %v3341_v58 = vld [vmem:[%s2796_s19 + $0x78] sm:$0xff] }
 0x11d   : > { %v3322_v37 = vpop.permute.xlu2 %804  ;;  %v3324_v44 = vpop.permute.xlu1 %553  ;;  %v608_v49 = vsel %vm597_vm1, %v3341_v58, %v3060_v19  ;;  %v256_v19 = vld [vmem:[%s2796_s19 + $0x80] sm:$0xff] }
 0x11e   : > { %v3329_v51 = vpop.permute.xlu0 %551  ;;  %v641_v15 = vsel %vm630_vm2, %v608_v49, %v3228_v1  ;;  %v2655_v1 = vld [vmem:[%s4225_s1 + $0x28] sm:$0xf] }
 0x11f   : > { %2656 = vmatpush.msk.msra.mxu2 %vm1184_vm0, %v2655_v1 }
 0x120   : > { %2535 = vmatmul.msk.f32.gmra.mxu1 %vm1087_vm3, %v640_v5 }
 0x121   : > { %2049 = vmatpush.msra.mxu2 %v2654_v21 }
 0x123   : > { %1656 = vrot.lane.b32.xlu1 %v2841_v10, %s2750_s20  ;;  %984 = vrot.lane.b32.xlu2 %v3335_v43, %s2751_s21  ;;  %v2490_v43 = vld [vmem:[%s4225_s1 + $0x10] sm:$0xff] }
 0x124   : > { %856 = vrot.lane.b32.xlu0 %v3338_v24, %s2750_s20  ;;  %2693 = vmatpush.msra.mxu3 %v2490_v43 }
 0x125   : > { %v3352_v57 = vpop.permute.xlu2 %810  ;;  %v3354_v11 = vpop.permute.xlu1 %559  ;;  %1203 = vmatpush.msra.mxu0 %v2490_v43  ;;  %v609_v43 = vsel %vm597_vm1, %v256_v19, %v2993_v48 }
 0x126   : > { %4267 = vst [vmem:[#allocation26_spill] sm:$0xff] %v3354_v11  ;;  %v3361_v5 = vpop.permute.xlu0 %557  ;;  %v3370_v11 = vld [vmem:[%s2796_s19 + $0x189] sm:$0xff]  ;;  %2694 = vmatpush.msk.msrb.mxu3 %vm1184_vm0, %v3056_v16  ;;  %v642_v49 = vsel %vm630_vm2, %v609_v43, %v3223_v33 }
 0x127   : > { %4268 = vst [vmem:[#allocation27_spill] sm:$0xff] %v3361_v5 }
 0x128   : > { %2536 = vmatmul.msk.f32.gmra.mxu1 %vm1087_vm3, %v641_v15  ;;  %4269 = vst [vmem:[#allocation28_spill] sm:$0xff] %v3370_v11  ;;  %2695 = vmatpush.msrb.mxu3 %v3069_v22  ;;  %v3397_v22 = vld [vmem:[%s2796_s19 + $0x18a] sm:$0xff] }
 0x129   : > { %4271 = vst [vmem:[#allocation30_spill] sm:$0xff] %v3397_v22 }
 0x12b   : > { %936 = vrot.lane.b32.xlu1 %v2965_v42, %s2751_s21  ;;  %858 = vrot.lane.b32.xlu2 %v3370_v11, %s2750_s20  ;;  %v3400_v11 = vld [vmem:[%s2796_s19 + $0x90] sm:$0xff] }
 0x12c   : > { %1784 = vrot.lane.b32.xlu0 %v2985_v47, %s2751_s21  ;;  %v610_v33 = vsel %vm597_vm1, %v3400_v11, %v3082_v63 }
 0x12d   : > { %v973_v15 = vpop.permute.xlu2 %972  ;;  %v797_v16 = vpop.permute.xlu1 %796 }
 0x12e   : > { %v3388_v42 = vpop.permute.xlu0 %563 }
 0x12f   : > { %4270 = vst [vmem:[#allocation29_spill] sm:$0xff] %v3388_v42 }
 0x130   : > { %2537 = vmatmul.msk.f32.gmra.mxu1 %vm1087_vm3, %v642_v49  ;;  %v643_v49 = vsel %vm630_vm2, %v610_v33, %v3175_v0 }
 0x133   : > { %986 = vrot.lane.b32.xlu1 %v3397_v22, %s2751_s21  ;;  %1786 = vrot.lane.b32.xlu2 %v2982_v46, %s2751_s21  ;;  %v258_v22 = vld [vmem:[%s2796_s19 + $0x98] sm:$0xff] }
 0x134   : > { %1658 = vrot.lane.b32.xlu0 %v2838_v9, %s2750_s20  ;;  %v611_v24 = vsel %vm597_vm1, %v258_v22, %v3080_v35 }
 0x135   : > { %v847_v48 = vpop.permute.xlu2 %846  ;;  %v3408_v19 = vpop.permute.xlu1 %802  ;;  %v644_v33 = vsel %vm630_vm2, %v611_v24, %v3248_v2  ;;  %v3446_v2 = vld [vmem:[%s2796_s19 + $0x138] sm:$0xff] }
 0x136   : > { %v3413_v43 = vpop.permute.xlu0 %800 }
 0x138   : > { %2538 = vmatmul.msk.f32.gmra.mxu1 %vm1087_vm3, %v643_v49  ;;  %v259_v49 = vld [vmem:[%s2796_s19 + $0xa8] sm:$0xff] }
 0x139   : > { %v612_v22 = vsel %vm597_vm1, %v259_v49, %v3014_v54  ;;  %v1020_v54 = vsel %vm597_vm1, %v3182_v59, %v797_v16  ;;  %v261_v59 = vld [vmem:[%s2796_s19 + $0xc0] sm:$0xff] }
 0x13b   : > { %1660 = vrot.lane.b32.xlu1 %v2859_v14, %s2750_s20  ;;  %1788 = vrot.lane.b32.xlu2 %v2979_v45, %s2751_s21 }
 0x13c   : > { %938 = vrot.lane.b32.xlu0 %v2962_v41, %s2751_s21 }
 0x13d   : > { %v1775_v42 = vpop.permute.xlu2 %1774  ;;  %v3425_v63 = vpop.permute.xlu1 %808 }
 0x13e   : > { %v3429_v0 = vpop.permute.xlu0 %806 }
 0x140   : > { %2539 = vmatmul.msk.f32.gmra.mxu1 %vm1087_vm3, %v644_v33 }
 0x143   : > { %940 = vrot.lane.b32.xlu1 %v2985_v47, %s2751_s21  ;;  %1662 = vrot.lane.b32.xlu2 %v2856_v13, %s2750_s20  ;;  %v645_v47 = vsel %vm630_vm2, %v612_v22, %v3243_v36  ;;  %v614_v22 = vsel %vm597_vm1, %v261_v59, %v3092_v25  ;;  %v4272_v25 = vld [vmem:[#allocation4_spill] sm:$0xff] }
 0x144   : > { %812 = vrot.lane.b32.xlu0 %v2841_v10, %s2750_s20  ;;  %v260_v10 = vld [vmem:[%s2796_s19 + $0xb0] sm:$0xff] }
 0x145   : > { %v3441_v41 = vpop.permute.xlu2 %1648  ;;  %v1645_v35 = vpop.permute.xlu1 %1644 }
 0x146   : > { %v845_v24 = vpop.permute.xlu0 %844 }
 0x147   : > { %v1044_v33 = vsel %vm597_vm1, %v3446_v2, %v845_v24 }
 0x148   : > { %2540 = vmatmul.msk.f32.gmra.mxu1 %vm1087_vm3, %v645_v47  ;;  %v1076_v5 = vsel %vm630_vm2, %v1044_v33, %v973_v15 }
 0x149   : > { %2517 = vmatmul.msk.f32.vlgmr.msra.gmra.mxu3 %vm1087_vm3, %v1076_v5 }
 0x14a   : > { %2696 = vmatpush.msk.msra.mxu3 %vm1184_vm0, %v2655_v1  ;;  %v613_v1 = vsel %vm597_vm1, %v260_v10, %v3094_v26  ;;  %v3482_v26 = vld [vmem:[%s2796_s19 + $0x140] sm:$0xff]  ;;  %v262_v10 = vld [vmem:[%s2796_s19 + $0xc8] sm:$0xff] }
 0x14b   : > { %814 = vrot.lane.b32.xlu1 %v2838_v9, %s2750_s20  ;;  %942 = vrot.lane.b32.xlu2 %v2982_v46, %s2751_s21  ;;  %v1868_v9 = vsel %vm597_vm1, %v3213_v8, %v1645_v35  ;;  %v646_v46 = vsel %vm630_vm2, %v613_v1, %v3189_v29  ;;  %v1045_v29 = vsel %vm597_vm1, %v3482_v26, %v847_v48 }
 0x14c   : > { %1790 = vrot.lane.b32.xlu0 %v3006_v53, %s2751_s21  ;;  %2697 = vmatpush.msra.mxu3 %v2654_v21 }
 0x14d   : > { %v929_v36 = vpop.permute.xlu2 %928  ;;  %v925_v5 = vpop.permute.xlu1 %924 }
 0x14e   : > { %v1773_v15 = vpop.permute.xlu0 %1772  ;;  %v1052_v49 = vsel %vm630_vm2, %v1020_v54, %v925_v5  ;;  %v4273_v54 = vld [vmem:[#allocation8_spill] sm:$0xff] }
 0x14f   : > { %2493 = vmatmul.msk.f32.vlgmr.msra.gmra.mxu0 %vm1087_vm3, %v1052_v49  ;;  %v1900_v21 = vsel %vm630_vm2, %v1868_v9, %v1773_v15  ;;  %v615_v5 = vsel %vm597_vm1, %v262_v10, %v4273_v54  ;;  %v2439_v54 = vld [vmem:[%s2796_s19 + $0xb1] sm:$0xff] }
 0x150   : > { %2541 = vmatmul.msk.f32.gmra.mxu1 %vm1087_vm3, %v646_v46  ;;  %2657 = vmatmul.msk.f32.vlgmr.msra.gmra.mxu2 %vm1087_vm3, %v1900_v21  ;;  %v648_v15 = vsel %vm630_vm2, %v615_v5, %v3263_v27  ;;  %v1022_v27 = vsel %vm597_vm1, %v3213_v8, %v3413_v43  ;;  %v1870_v46 = vsel %vm597_vm1, %v3253_v55, %v3441_v41  ;;  %v264_v41 = vld [vmem:[%s2796_s19 + $0xe0] sm:$0xff] }
 0x151   : > { %v4277_v5 = vld [vmem:[#allocation6_spill] sm:$0xff] }
 0x153   : > { %1792 = vrot.lane.b32.xlu1 %v3003_v52, %s2751_s21  ;;  %816 = vrot.lane.b32.xlu2 %v2859_v14, %s2750_s20  ;;  %v647_v14 = vsel %vm630_vm2, %v614_v22, %v3268_v34 }
 0x154   : > { %1664 = vrot.lane.b32.xlu0 %v2853_v12, %s2750_s20 }
 0x155   : > { %v979_v16 = vpop.permute.xlu2 %978  ;;  %v975_v35 = vpop.permute.xlu1 %974 }
 0x156   : > { %v1647_v24 = vpop.permute.xlu0 %1646  ;;  %v1077_v33 = vsel %vm630_vm2, %v1045_v29, %v975_v35  ;;  %v4274_v29 = vld [vmem:[#allocation16_spill] sm:$0xff]  ;;  %v1054_v35 = vsel %vm630_vm2, %v1022_v27, %v929_v36  ;;  %v4275_v36 = vld [vmem:[#allocation7_spill] sm:$0xff] }
 0x157   : > { %v1869_v47 = vsel %vm597_vm1, %v3233_v39, %v1647_v24  ;;  %2518 = vmatmul.msk.f32.gmra.mxu3 %vm1087_vm3, %v1077_v33  ;;  %v3560_v33 = vld [vmem:[%s2796_s19 + $0x158] sm:$0xff] }
 0x158   : > { %2542 = vmatmul.msk.f32.gmra.mxu1 %vm1087_vm3, %v647_v14  ;;  %v1901_v48 = vsel %vm630_vm2, %v1869_v47, %v1775_v42  ;;  %v1021_v42 = vsel %vm597_vm1, %v3197_v50, %v3302_v6  ;;  %v263_v50 = vld [vmem:[%s2796_s19 + $0xd8] sm:$0xff]  ;;  %v3529_v6 = vld [vmem:[%s2796_s19 + $0x150] sm:$0xff]  ;;  %v4276_v14 = vld [vmem:[#allocation15_spill] sm:$0xff] }
 0x159   : > { %2658 = vmatmul.msk.f32.gmra.mxu2 %vm1087_vm3, %v1901_v48  ;;  %v617_v48 = vsel %vm597_vm1, %v264_v41, %v4276_v14 }
 0x15b   : > { %1666 = vrot.lane.b32.xlu1 %v2872_v17, %s2750_s20  ;;  %1794 = vrot.lane.b32.xlu2 %v4272_v25, %s2751_s21 }
 0x15c   : > { %944 = vrot.lane.b32.xlu0 %v2979_v45, %s2751_s21  ;;  %v3519_v45 = vld [vmem:[%s2796_s19 + $0xc1] sm:$0xff] }
 0x15d   : > { %v3506_v34 = vpop.permute.xlu2 %852  ;;  %v849_v1 = vpop.permute.xlu1 %848 }
 0x15e   : > { %v927_v9 = vpop.permute.xlu0 %926 }
 0x15f   : > { %v1053_v17 = vsel %vm630_vm2, %v1021_v42, %v927_v9  ;;  %v265_v42 = vld [vmem:[%s2796_s19 + $0xf0] sm:$0xff] }
 0x160   : > { %2494 = vmatmul.msk.f32.gmra.mxu0 %vm1087_vm3, %v1053_v17  ;;  %2543 = vmatmul.msk.f32.gmra.mxu1 %vm1087_vm3, %v648_v15 }
 0x163   : > { %946 = vrot.lane.b32.xlu1 %v3006_v53, %s2751_s21  ;;  %1668 = vrot.lane.b32.xlu2 %v3519_v45, %s2750_s20  ;;  %v1046_v53 = vsel %vm597_vm1, %v3529_v6, %v849_v1  ;;  %v4278_v1 = vld [vmem:[#allocation2_spill] sm:$0xff] }
 0x164   : > { %818 = vrot.lane.b32.xlu0 %v2856_v13, %s2750_s20  ;;  %v616_v13 = vsel %vm597_vm1, %v263_v50, %v4274_v29  ;;  %v4279_v50 = vld [vmem:[#allocation11_spill] sm:$0xff] }
 0x165   : > { %v1781_v49 = vpop.permute.xlu2 %1780  ;;  %v1777_v21 = vpop.permute.xlu1 %1776  ;;  %v649_v43 = vsel %vm630_vm2, %v616_v13, %v3205_v3  ;;  %v618_v27 = vsel %vm597_vm1, %v265_v42, %v4279_v50  ;;  %v3600_v29 = vld [vmem:[%s2796_s19 + $0x168] sm:$0xff] }
 0x166   : > { %v977_v59 = vpop.permute.xlu0 %976  ;;  %v1902_v8 = vsel %vm630_vm2, %v1870_v46, %v1777_v21  ;;  %v651_v21 = vsel %vm630_vm2, %v618_v27, %v3284_v62  ;;  %v1048_v62 = vsel %vm597_vm1, %v3600_v29, %v3506_v34  ;;  %v1024_v34 = vsel %vm597_vm1, %v3253_v55, %v3322_v37  ;;  %v268_v55 = vld [vmem:[%s2796_s19 + $0x110] sm:$0xff]  ;;  %v4283_v37 = vld [vmem:[#allocation10_spill] sm:$0xff] }
 0x167   : > { %v1078_v22 = vsel %vm630_vm2, %v1046_v53, %v977_v59  ;;  %2659 = vmatmul.msk.f32.gmra.mxu2 %vm1087_vm3, %v1902_v8  ;;  %v266_v59 = vld [vmem:[%s2796_s19 + $0xf8] sm:$0xff] }
 0x168   : > { %2495 = vmatmul.msk.f32.gmra.mxu0 %vm1087_vm3, %v1054_v35  ;;  %2519 = vmatmul.msk.f32.gmra.mxu3 %vm1087_vm3, %v1078_v22  ;;  %v619_v8 = vsel %vm597_vm1, %v266_v59, %v3131_v60  ;;  %v267_v60 = vld [vmem:[%s2796_s19 + $0x108] sm:$0xff]  ;;  %v2442_v59 = vld [vmem:[%s2796_s19 + $0xd9] sm:$0xff] }
 0x169   : > { %2544 = vmatmul.msk.f32.gmra.mxu1 %vm1087_vm3, %v649_v43 }
 0x16b   : > { %820 = vrot.lane.b32.xlu1 %v2853_v12, %s2750_s20  ;;  %948 = vrot.lane.b32.xlu2 %v3003_v52, %s2751_s21  ;;  %v650_v52 = vsel %vm630_vm2, %v617_v48, %v3289_v56  ;;  %v1023_v56 = vsel %vm597_vm1, %v3233_v39, %v3408_v19  ;;  %v4280_v39 = vld [vmem:[#allocation3_spill] sm:$0xff]  ;;  %v4281_v19 = vld [vmem:[#allocation5_spill] sm:$0xff] }
 0x16c   : > { %1796 = vrot.lane.b32.xlu0 %v4275_v36, %s2751_s21  ;;  %v4282_v48 = vld [vmem:[#allocation17_spill] sm:$0xff] }
 0x16d   : > { %v3557_v24 = vpop.permute.xlu2 %1654  ;;  %v1651_v3 = vpop.permute.xlu1 %1650 }
 0x16e   : > { %v851_v47 = vpop.permute.xlu0 %850  ;;  %v1873_v42 = vsel %vm597_vm1, %v3314_v31, %v3557_v24  ;;  %v3669_v24 = vld [vmem:[%s2796_s19 + $0xf1] sm:$0xff] }
 0x16f   : > { %v1047_v12 = vsel %vm597_vm1, %v3560_v33, %v851_v47  ;;  %v3615_v47 = vld [vmem:[%s2796_s19 + $0xe1] sm:$0xff] }
 0x170   : > { %v1079_v10 = vsel %vm630_vm2, %v1047_v12, %v979_v16  ;;  %v1871_v16 = vsel %vm597_vm1, %v3274_v38, %v1651_v3 }
 0x171   : > { %2545 = vmatmul.msk.f32.gmra.mxu1 %vm1087_vm3, %v650_v52  ;;  %2520 = vmatmul.msk.f32.gmra.mxu3 %vm1087_vm3, %v1079_v10  ;;  %v2441_v10 = vld [vmem:[%s2796_s19 + $0xc9] sm:$0xff] }
 0x173   : > { %1798 = vrot.lane.b32.xlu1 %v4277_v5, %s2751_s21  ;;  %822 = vrot.lane.b32.xlu2 %v2439_v54, %s2750_s20 }
 0x174   : > { %1670 = vrot.lane.b32.xlu0 %v4278_v1, %s2750_s20 }
 0x175   : > { %v935_v9 = vpop.permute.xlu2 %934  ;;  %v931_v17 = vpop.permute.xlu1 %930 }
 0x176   : > { %v1779_v15 = vpop.permute.xlu0 %1778  ;;  %v1055_v46 = vsel %vm630_vm2, %v1023_v56, %v931_v17 }
 0x177   : > { %v1903_v53 = vsel %vm630_vm2, %v1871_v16, %v1779_v15  ;;  %2496 = vmatmul.msk.f32.gmra.mxu0 %vm1087_vm3, %v1055_v46  ;;  %v4284_v16 = vld [vmem:[#allocation12_spill] sm:$0xff]  ;;  %v3677_v46 = vld [vmem:[%s2796_s19 + $0x180] sm:$0xff] }
 0x178   : > { %2660 = vmatmul.msk.f32.gmra.mxu2 %vm1087_vm3, %v1903_v53  ;;  %v621_v17 = vsel %vm597_vm1, %v268_v55, %v4284_v16  ;;  %v4286_v55 = vld [vmem:[#allocation19_spill] sm:$0xff] }
 0x179   : > { %2546 = vmatmul.msk.f32.gmra.mxu1 %vm1087_vm3, %v651_v21  ;;  %v3748_v16 = vld [vmem:[%s2796_s19 + $0x10a] sm:$0xff] }
 0x17b   : > { %1672 = vrot.lane.b32.xlu1 %v4280_v39, %s2750_s20  ;;  %1800 = vrot.lane.b32.xlu2 %v4281_v19, %s2751_s21 }
 0x17c   : > { %950 = vrot.lane.b32.xlu0 %v4272_v25, %s2751_s21  ;;  %v652_v25 = vsel %vm630_vm2, %v619_v8, %v3221_v28 }
 0x17d   : > { %v985_v13 = vpop.permute.xlu2 %984  ;;  %v981_v35 = vpop.permute.xlu1 %980 }
 0x17e   : > { %v1653_v22 = vpop.permute.xlu0 %1652  ;;  %v1080_v41 = vsel %vm630_vm2, %v1048_v62, %v981_v35  ;;  %v2474_v62 = vld [vmem:[%s2796_s19 + $0xda] sm:$0xff] }
 0x17f   : > { %v1872_v43 = vsel %vm597_vm1, %v3294_v40, %v1653_v22  ;;  %2521 = vmatmul.msk.f32.gmra.mxu3 %vm1087_vm3, %v1080_v41 }
 0x180   : > { %v1904_v3 = vsel %vm630_vm2, %v1872_v43, %v1781_v49 }
 0x181   : > { %2547 = vmatmul.msk.f32.gmra.mxu1 %vm1087_vm3, %v652_v25  ;;  %2661 = vmatmul.msk.f32.gmra.mxu2 %vm1087_vm3, %v1904_v3  ;;  %v3702_v3 = vld [vmem:[%s2796_s19 + $0xfa] sm:$0xff] }
 0x183   : > { %952 = vrot.lane.b32.xlu1 %v4275_v36, %s2751_s21  ;;  %1674 = vrot.lane.b32.xlu2 %v3615_v47, %s2750_s20  ;;  %v620_v36 = vsel %vm597_vm1, %v267_v60, %v4282_v48  ;;  %v3705_v60 = vld [vmem:[%s2796_s19 + $0xf9] sm:$0xff] }
 0x184   : > { %824 = vrot.lane.b32.xlu0 %v3519_v45, %s2750_s20  ;;  %v653_v52 = vsel %vm630_vm2, %v620_v36, %v3309_v32  ;;  %v3646_v45 = vld [vmem:[%s2796_s19 + $0x170] sm:$0xff]  ;;  %v1025_v32 = vsel %vm597_vm1, %v3274_v38, %v3429_v0  ;;  %v654_v38 = vsel %vm630_vm2, %v621_v17, %v3304_v61  ;;  %v4287_v17 = vld [vmem:[#allocation18_spill] sm:$0xff] }
 0x185   : > { %v3626_v28 = vpop.permute.xlu2 %858  ;;  %v855_v49 = vpop.permute.xlu1 %854  ;;  %v1057_v15 = vsel %vm630_vm2, %v1025_v32, %v935_v9  ;;  %v2614_v0 = vld [vmem:[%s2796_s19 + $0x151] sm:$0xff] }
 0x186   : > { %v933_v14 = vpop.permute.xlu0 %932  ;;  %v4285_v9 = vld [vmem:[#allocation9_spill] sm:$0xff] }
 0x187   : > { %v1056_v12 = vsel %vm630_vm2, %v1024_v34, %v933_v14 }
 0x188   : > { %2497 = vmatmul.msk.f32.gmra.mxu0 %vm1087_vm3, %v1056_v12 }
 0x189   : > { %2548 = vmatmul.msk.f32.gmra.mxu1 %vm1087_vm3, %v653_v52  ;;  %v2475_v52 = vld [vmem:[%s2796_s19 + $0xe2] sm:$0xff] }
 0x18b   : > { %826 = vrot.lane.b32.xlu1 %v2441_v10, %s2750_s20  ;;  %954 = vrot.lane.b32.xlu2 %v4277_v5, %s2751_s21  ;;  %v1049_v5 = vsel %vm597_vm1, %v3646_v45, %v855_v49  ;;  %v269_v10 = vld [vmem:[%s2796_s19 + $0x120] sm:$0xff] }
 0x18c   : > { %1802 = vrot.lane.b32.xlu0 %v4283_v37, %s2751_s21  ;;  %v622_v37 = vsel %vm597_vm1, %v269_v10, %v4286_v55  ;;  %v4290_v55 = vld [vmem:[#allocation27_spill] sm:$0xff] }
 0x18d   : > { %v1787_v54 = vpop.permute.xlu2 %1786  ;;  %v1783_v1 = vpop.permute.xlu1 %1782 }
 0x18e   : > { %v983_v56 = vpop.permute.xlu0 %982  ;;  %v1905_v27 = vsel %vm630_vm2, %v1873_v42, %v1783_v1  ;;  %v2616_v1 = vld [vmem:[%s2796_s19 + $0x169] sm:$0xff] }
 0x18f   : > { %v1081_v50 = vsel %vm630_vm2, %v1049_v5, %v983_v56  ;;  %2662 = vmatmul.msk.f32.gmra.mxu2 %vm1087_vm3, %v1905_v27 }
 0x190   : > { %2498 = vmatmul.msk.f32.gmra.mxu0 %vm1087_vm3, %v1057_v15  ;;  %2522 = vmatmul.msk.f32.gmra.mxu3 %vm1087_vm3, %v1081_v50 }
 0x191   : > { %2549 = vmatmul.msk.f32.gmra.mxu1 %vm1087_vm3, %v654_v38 }
 0x193   : > { %1692 = vrot.lane.b32.xlu1 %v2614_v0, %s2750_s20  ;;  %1804 = vrot.lane.b32.xlu2 %v4285_v9, %s2751_s21 }
 0x194   : > { %1676 = vrot.lane.b32.xlu0 %v3669_v24, %s2750_s20 }
 0x195   : > { %v1789_v53 = vpop.permute.xlu2 %1788  ;;  %v1657_v21 = vpop.permute.xlu1 %1656 }
 0x196   : > { %v857_v61 = vpop.permute.xlu0 %856  ;;  %v1874_v22 = vsel %vm597_vm1, %v3341_v58, %v1657_v21  ;;  %v2565_v58 = vld [vmem:[%s2796_s19 + $0x80] sm:$0xff]  ;;  %v3771_v21 = vld [vmem:[%s2796_s19 + $0x98] sm:$0xff] }
 0x197   : > { %v1050_v39 = vsel %vm597_vm1, %v3677_v46, %v857_v61  ;;  %v4288_v61 = vld [vmem:[#allocation13_spill] sm:$0xff] }
 0x198   : > { %v1082_v19 = vsel %vm630_vm2, %v1050_v39, %v985_v13  ;;  %v1026_v13 = vsel %vm597_vm1, %v3294_v40, %v3425_v63  ;;  %v3708_v40 = vld [vmem:[%s2796_s19 + $0x188] sm:$0xff]  ;;  %v624_v39 = vsel %vm597_vm1, %v3446_v2, %v4288_v61  ;;  %v4295_v61 = vld [vmem:[#allocation22_spill] sm:$0xff] }
 0x199   : > { %2523 = vmatmul.msk.f32.gmra.mxu3 %vm1087_vm3, %v1082_v19  ;;  %v1051_v34 = vsel %vm597_vm1, %v3708_v40, %v3626_v28 }
 0x19b   : > { %828 = vrot.lane.b32.xlu1 %v2442_v59, %s2750_s20  ;;  %956 = vrot.lane.b32.xlu2 %v2474_v62, %s2751_s21 }
 0x19c   : > { %1820 = vrot.lane.b32.xlu0 %v3103_v18, %s2751_s21  ;;  %v2615_v18 = vld [vmem:[%s2796_s19 + $0x159] sm:$0xff] }
 0x19d   : > { %v3689_v35 = vpop.permute.xlu2 %1662  ;;  %v937_v8 = vpop.permute.xlu1 %936 }
 0x19e   : > { %v1785_v43 = vpop.permute.xlu0 %1784  ;;  %v1058_v41 = vsel %vm630_vm2, %v1026_v13, %v937_v8  ;;  %v1877_v19 = vsel %vm597_vm1, %v3771_v21, %v3689_v35  ;;  %v657_v13 = vsel %vm630_vm2, %v624_v39, %v3324_v44  ;;  %v3795_v8 = vld [vmem:[%s2796_s19 + $0x112] sm:$0xff]  ;;  %v3807_v44 = vld [vmem:[%s2796_s19 + $0xa8] sm:$0xff]  ;;  %v628_v39 = vsel %vm597_vm1, %v3600_v29, %v4295_v61  ;;  %v3976_v61 = vld [vmem:[%s2796_s19 + $0xe0] sm:$0xff] }
 0x19f   : > { %v1906_v25 = vsel %vm630_vm2, %v1874_v22, %v1785_v43  ;;  %2499 = vmatmul.msk.f32.gmra.mxu0 %vm1087_vm3, %v1058_v41  ;;  %v2617_v22 = vld [vmem:[%s2796_s19 + $0x171] sm:$0xff]  ;;  %v625_v41 = vsel %vm597_vm1, %v3482_v26, %v3155_v23 }
 0x1a0   : > { %2663 = vmatmul.msk.f32.gmra.mxu2 %vm1087_vm3, %v1906_v25  ;;  %v3799_v35 = vld [vmem:[%s2796_s19 + $0x111] sm:$0xff] }
 0x1a1   : > { %v3829_v23 = vld [vmem:[%s2796_s19 + $0xb0] sm:$0xff] }
 0x1a2   : > { %v4289_v26 = vld [vmem:[#allocation20_spill] sm:$0xff] }
 0x1a3   : > { %1694 = vrot.lane.b32.xlu1 %v2615_v18, %s2750_s20  ;;  %1806 = vrot.lane.b32.xlu2 %v3702_v3, %s2751_s21 }
 0x1a4   : > { %1678 = vrot.lane.b32.xlu0 %v3705_v60, %s2750_s20 }
 0x1a5   : > { %v943_v63 = vpop.permute.xlu2 %942  ;;  %v987_v49 = vpop.permute.xlu1 %986 }
 0x1a6   : > { %v1659_v14 = vpop.permute.xlu0 %1658  ;;  %v1083_v36 = vsel %vm630_vm2, %v1051_v34, %v987_v49  ;;  %v2649_v49 = vld [vmem:[%s2796_s19 + $0x172] sm:$0xff] }
 0x1a7   : > { %v1875_v48 = vsel %vm597_vm1, %v2565_v58, %v1659_v14  ;;  %2524 = vmatmul.msk.f32.gmra.mxu3 %vm1087_vm3, %v1083_v36  ;;  %v2404_v14 = vld [vmem:[%s2796_s19 + $0x90] sm:$0xff] }
 0x1a8   : > { %v1907_v12 = vsel %vm630_vm2, %v1875_v48, %v1787_v54  ;;  %v1027_v54 = vsel %vm597_vm1, %v3314_v31, %v3352_v57  ;;  %v3751_v31 = vld [vmem:[%s2796_s19 + $0x109] sm:$0xff]  ;;  %v2402_v57 = vld [vmem:[%s2796_s19 + $0x78] sm:$0xff]  ;;  %v626_v48 = vsel %vm597_vm1, %v3529_v6, %v4289_v26 }
 0x1a9   : > { %2664 = vmatmul.msk.f32.gmra.mxu2 %vm1087_vm3, %v1907_v12 }
 0x1ab   : > { %830 = vrot.lane.b32.xlu1 %v3615_v47, %s2750_s20  ;;  %958 = vrot.lane.b32.xlu2 %v2475_v52, %s2751_s21  ;;  %v655_v47 = vsel %vm630_vm2, %v622_v37, %v3241_v4  ;;  %v270_v4 = vld [vmem:[%s2796_s19 + $0x128] sm:$0xff]  ;;  %v659_v37 = vsel %vm630_vm2, %v626_v48, %v4290_v55  ;;  %v3942_v55 = vld [vmem:[%s2796_s19 + $0xd8] sm:$0xff] }
 0x1ac   : > { %1822 = vrot.lane.b32.xlu0 %v3100_v20, %s2751_s21  ;;  %v623_v15 = vsel %vm597_vm1, %v270_v4, %v4287_v17  ;;  %v4292_v4 = vld [vmem:[#allocation14_spill] sm:$0xff] }
 0x1ad   : > { %v3731_v28 = vpop.permute.xlu2 %816  ;;  %v1661_v32 = vpop.permute.xlu1 %1660  ;;  %v656_v0 = vsel %vm630_vm2, %v623_v15, %v3329_v51 }
 0x1ae   : > { %v939_v42 = vpop.permute.xlu0 %938  ;;  %v1876_v5 = vsel %vm597_vm1, %v3400_v11, %v1661_v32  ;;  %v1030_v36 = vsel %vm597_vm1, %v2404_v14, %v3731_v28  ;;  %v1417_v28 = vpop.f32.mrf.mxu1  ;;  %v3850_v32 = vld [vmem:[%s2796_s19 + $0x121] sm:$0xff]  ;;  %v4299_v14 = vld [vmem:[#allocation29_spill] sm:$0xff] }
 0x1af   : > { %v1059_v20 = vsel %vm630_vm2, %v1027_v54, %v939_v42  ;;  %2550 = vmatmul.msk.f32.vlgmr.msrb.gmra.mxu3 %vm1087_vm3, %v655_v47  ;;  %v1908_v56 = vsel %vm630_vm2, %v1876_v5, %v1789_v53  ;;  %v2476_v53 = vld [vmem:[%s2796_s19 + $0xf2] sm:$0xff]  ;;  %v3847_v54 = vld [vmem:[%s2796_s19 + $0x122] sm:$0xff]  ;;  %v3857_v47 = vld [vmem:[%s4226_s2] ss:$0 sm:$0xff] }
 0x1b0   : > { %2500 = vmatmul.msk.f32.gmra.mxu0 %vm1087_vm3, %v1059_v20  ;;  %v4291_v20 = vld [vmem:[#allocation25_spill] sm:$0xff] }
 0x1b1   : > { %2665 = vmatmul.msk.f32.gmra.mxu2 %vm1087_vm3, %v1908_v56 }
 0x1b3   : > { %1696 = vrot.lane.b32.xlu1 %v2616_v1, %s2750_s20  ;;  %1808 = vrot.lane.b32.xlu2 %v3748_v16, %s2751_s21 }
 0x1b4   : > { %1680 = vrot.lane.b32.xlu0 %v3751_v31, %s2750_s20 }
 0x1b5   : > { %v1795_v11 = vpop.permute.xlu2 %1794  ;;  %v941_v50 = vpop.permute.xlu1 %940 }
 0x1b6   : > { %v813_v27 = vpop.permute.xlu0 %812 }
 0x1b7   : > { %v1028_v38 = vsel %vm597_vm1, %v2402_v57, %v813_v27  ;;  %2551 = vmatmul.msk.f32.gmra.mxu3 %vm1087_vm3, %v656_v0  ;;  %v627_v57 = vsel %vm597_vm1, %v3560_v33, %v4292_v4  ;;  %v4293_v27 = vld [vmem:[#allocation26_spill] sm:$0xff]  ;;  %v4294_v33 = vld [vmem:[#allocation24_spill] sm:$0xff] }
 0x1b8   : > { %v1060_v9 = vsel %vm630_vm2, %v1028_v38, %v941_v50  ;;  %v660_v38 = vsel %vm630_vm2, %v627_v57, %v4293_v27  ;;  %v2620_v4 = vld [vmem:[%s2796_s19 + $0x199] sm:$0xff] }
 0x1b9   : > { %2501 = vmatmul.msk.f32.gmra.mxu0 %vm1087_vm3, %v1060_v9  ;;  %v3885_v9 = vld [vmem:[%s2796_s19 + $0xc0] sm:$0xff] }
 0x1bb   : > { %832 = vrot.lane.b32.xlu1 %v3669_v24, %s2750_s20  ;;  %960 = vrot.lane.b32.xlu2 %v2476_v53, %s2751_s21  ;;  %v1420_v53 = vpop.f32.mrf.mxu1 }
 0x1bc   : > { %1824 = vrot.lane.b32.xlu0 %v3097_v30, %s2751_s21 }
 0x1bd   : > { %v3778_v51 = vpop.permute.xlu2 %1668  ;;  %v815_v59 = vpop.permute.xlu1 %814 }
 0x1be   : > { %v1791_v62 = vpop.permute.xlu0 %1790  ;;  %v1029_v24 = vsel %vm597_vm1, %v2565_v58, %v815_v59 }
 0x1bf   : > { %v1909_v30 = vsel %vm630_vm2, %v1877_v19, %v1791_v62  ;;  %2552 = vmatmul.msk.f32.gmra.mxu3 %vm1087_vm3, %v657_v13  ;;  %v1061_v2 = vsel %vm630_vm2, %v1029_v24, %v943_v63  ;;  %v658_v63 = vsel %vm630_vm2, %v625_v41, %v3261_v7  ;;  %v1880_v19 = vsel %vm597_vm1, %v3885_v9, %v3778_v51  ;;  %v4296_v13 = vld [vmem:[#allocation23_spill] sm:$0xff] }
 0x1c0   : > { %2666 = vmatmul.msk.f32.gmra.mxu2 %vm1087_vm3, %v1909_v30  ;;  %v661_v30 = vsel %vm630_vm2, %v628_v39, %v4296_v13  ;;  %v3911_v41 = vld [vmem:[%s2796_s19 + $0x12a] sm:$0xff]  ;;  %v2621_v13 = vld [vmem:[%s2796_s19 + $0x1a1] sm:$0xff] }
 0x1c1   : > { %2502 = vmatmul.msk.f32.gmra.mxu0 %vm1087_vm3, %v1061_v2 }
 0x1c3   : > { %1698 = vrot.lane.b32.xlu1 %v2617_v22, %s2750_s20  ;;  %1810 = vrot.lane.b32.xlu2 %v3795_v8, %s2751_s21 }
 0x1c4   : > { %1682 = vrot.lane.b32.xlu0 %v3799_v35, %s2750_s20 }
 0x1c5   : > { %v3809_v43 = vpop.permute.xlu2 %948  ;;  %v1793_v25 = vpop.permute.xlu1 %1792 }
 0x1c6   : > { %v1665_v18 = vpop.permute.xlu0 %1664 }
 0x1c7   : > { %v1878_v58 = vsel %vm597_vm1, %v3807_v44, %v1665_v18  ;;  %2553 = vmatmul.msk.f32.gmra.mxu3 %vm1087_vm3, %v658_v63  ;;  %v4297_v18 = vld [vmem:[#allocation28_spill] sm:$0xff] }
 0x1c8   : > { %v1910_v34 = vsel %vm630_vm2, %v1878_v58, %v1793_v25  ;;  %v2571_v58 = vld [vmem:[%s2796_s19 + $0xc8] sm:$0xff] }
 0x1c9   : > { %2667 = vmatmul.msk.f32.gmra.mxu2 %vm1087_vm3, %v1910_v34 }
 0x1cb   : > { %834 = vrot.lane.b32.xlu1 %v3705_v60, %s2750_s20  ;;  %962 = vrot.lane.b32.xlu2 %v3702_v3, %s2751_s21 }
 0x1cc   : > { %1826 = vrot.lane.b32.xlu0 %v2649_v49, %s2751_s21  ;;  %v1205_v52 = vpop.f32.mrf.mxu0 }
 0x1cd   : > { %v3831_v7 = vpop.permute.xlu2 %822  ;;  %v1667_v60 = vpop.permute.xlu1 %1666  ;;  %v1418_v42 = vadd.f32 %v1417_v28, %v1205_v52 }
 0x1ce   : > { %v945_v12 = vpop.permute.xlu0 %944  ;;  %v1879_v3 = vsel %vm597_vm1, %v3829_v23, %v1667_v60  ;;  %v1423_v52 = vpop.f32.mrf.mxu1 }
 0x1cf   : > { %v1062_v10 = vsel %vm630_vm2, %v1030_v36, %v945_v12  ;;  %2554 = vmatmul.msk.f32.gmra.mxu3 %vm1087_vm3, %v659_v37  ;;  %v1911_v6 = vsel %vm630_vm2, %v1879_v3, %v1795_v11  ;;  %v3944_v37 = vpop.f32.mrf.mxu3 }
 0x1d0   : > { %2503 = vmatmul.msk.f32.gmra.mxu0 %vm1087_vm3, %v1062_v10  ;;  %v4300_v10 = vld [vmem:[#allocation30_spill] sm:$0xff] }
 0x1d1   : > { %2668 = vmatmul.msk.f32.gmra.mxu2 %vm1087_vm3, %v1911_v6 }
 0x1d3   : > { %v2051_v5 = vpop.f32.mrf.mxu2  ;;  %1700 = vrot.lane.b32.xlu1 %v4291_v20, %s2750_s20  ;;  %1812 = vrot.lane.b32.xlu2 %v3847_v54, %s2751_s21 }
 0x1d4   : > { %v2147_v1 = vadd.f32 %v2051_v5, %v1418_v42  ;;  %1684 = vrot.lane.b32.xlu0 %v3850_v32, %s2750_s20 }
 0x1d5   : > { %v3870_v56 = vpop.permute.xlu2 %1800  ;;  %v947_v17 = vpop.permute.xlu1 %946 }
 0x1d6   : > { %v2183_v11 = vadd.f32 %v3857_v47, %v2147_v1  ;;  %v819_v15 = vpop.permute.xlu0 %818 }
 0x1d7   : > { %v1031_v50 = vsel %vm597_vm1, %v3771_v21, %v819_v15  ;;  %2555 = vmatmul.msk.f32.gmra.mxu3 %vm1087_vm3, %v660_v38  ;;  %v1426_v38 = vpop.f32.mrf.mxu1 }
 0x1d8   : > { %2215 = vst [vmem:[%s3868_s12] sm:$0xff] %v2183_v11  ;;  %v1063_v0 = vsel %vm630_vm2, %v1031_v50, %v947_v17  ;;  %v2644_v11 = vld [vmem:[%s2796_s19 + $0x13a] sm:$0xff] }
 0x1d9   : > { %2504 = vmatmul.msk.f32.gmra.mxu0 %vm1087_vm3, %v1063_v0  ;;  %v2612_v17 = vld [vmem:[%s2796_s19 + $0x139] sm:$0xff] }
 0x1db   : > { %836 = vrot.lane.b32.xlu1 %v3751_v31, %s2750_s20  ;;  %964 = vrot.lane.b32.xlu2 %v3748_v16, %s2751_s21 }
 0x1dc   : > { %1828 = vrot.lane.b32.xlu0 %v4294_v33, %s2751_s21  ;;  %v2054_v16 = vpop.f32.mrf.mxu2  ;;  %v2652_v33 = vld [vmem:[%s2796_s19 + $0x19a] sm:$0xff] }
 0x1dd   : > { %v1208_v21 = vpop.f32.mrf.mxu0  ;;  %v821_v31 = vpop.permute.xlu1 %820 }
 0x1de   : > { %v1421_v59 = vadd.f32 %v1420_v53, %v1208_v21  ;;  %v1797_v62 = vpop.permute.xlu0 %1796  ;;  %v1032_v24 = vsel %vm597_vm1, %v3807_v44, %v821_v31  ;;  %v3904_v29 = vpop.permute.xlu2 %1674  ;;  %v3915_v44 = vld [vmem:[%s2796_s19 + $0x129] sm:$0xff] }
 0x1df   : > { %v1912_v2 = vsel %vm630_vm2, %v1880_v19, %v1797_v62  ;;  %2556 = vmatmul.msk.f32.gmra.mxu3 %vm1087_vm3, %v661_v30  ;;  %v1064_v51 = vsel %vm630_vm2, %v1032_v24, %v3809_v43  ;;  %v4298_v43 = vld [vmem:[#allocation21_spill] sm:$0xff]  ;;  %v1883_v31 = vsel %vm597_vm1, %v3976_v61, %v3904_v29  ;;  %v2645_v30 = vld [vmem:[%s2796_s19 + $0x142] sm:$0xff]  ;;  %v1429_v29 = vpop.f32.mrf.mxu1 }
 0x1e0   : > { %v2148_v22 = vadd.f32 %v2054_v16, %v1421_v59  ;;  %2669 = vmatmul.msk.f32.gmra.mxu2 %vm1087_vm3, %v1912_v2  ;;  %v629_v63 = vsel %vm597_vm1, %v3646_v45, %v4298_v43  ;;  %v2613_v2 = vld [vmem:[%s2796_s19 + $0x141] sm:$0xff] }
 0x1e1   : > { %2505 = vmatmul.msk.f32.gmra.mxu0 %vm1087_vm3, %v1064_v51  ;;  %v662_v26 = vsel %vm630_vm2, %v629_v63, %v4299_v14  ;;  %v3998_v51 = vld [vmem:[%s2796_s19 + $0xf0] sm:$0xff] }
 0x1e2   : > { %v2184_v25 = vadd.f32 %v3857_v47, %v2148_v22 }
 0x1e3   : > { %1702 = vrot.lane.b32.xlu1 %v4297_v18, %s2750_s20  ;;  %1814 = vrot.lane.b32.xlu2 %v3911_v41, %s2751_s21 }
 0x1e4   : > { %2216 = vst [vmem:[%s3868_s12 + $0x8] sm:$0xff] %v2184_v25  ;;  %1686 = vrot.lane.b32.xlu0 %v3915_v44, %s2750_s20 }
 0x1e5   : > { %v1799_v34 = vpop.permute.xlu1 %1798  ;;  %v1211_v36 = vpop.f32.mrf.mxu0 }
 0x1e6   : > { %v1671_v49 = vpop.permute.xlu0 %1670  ;;  %v955_v48 = vpop.permute.xlu2 %954  ;;  %v1424_v3 = vadd.f32 %v1423_v52, %v1211_v36 }
 0x1e7   : > { %v1881_v60 = vsel %vm597_vm1, %v2571_v58, %v1671_v49  ;;  %2557 = vmatmul.msk.f32.gmra.mxu3 %vm1087_vm3, %v662_v26 }
 0x1e8   : > { %v1913_v12 = vsel %vm630_vm2, %v1881_v60, %v1799_v34  ;;  %v2582_v60 = vld [vmem:[%s2796_s19 + $0x150] sm:$0xff] }
 0x1e9   : > { %2670 = vmatmul.msk.f32.gmra.mxu2 %vm1087_vm3, %v1913_v12 }
 0x1ea   : > { %v2057_v45 = vpop.f32.mrf.mxu2 }
 0x1eb   : > { %838 = vrot.lane.b32.xlu1 %v3799_v35, %s2750_s20  ;;  %966 = vrot.lane.b32.xlu2 %v3795_v8, %s2751_s21  ;;  %v2149_v6 = vadd.f32 %v2057_v45, %v1424_v3  ;;  %v1033_v35 = vsel %vm597_vm1, %v3829_v23, %v3831_v7  ;;  %v3964_v23 = vpop.f32.mrf.mxu3 }
 0x1ec   : > { %1830 = vrot.lane.b32.xlu0 %v4300_v10, %s2751_s21 }
 0x1ed   : > { %v1673_v28 = vpop.permute.xlu1 %1672  ;;  %v2185_v42 = vadd.f32 %v3857_v47, %v2149_v6 }
 0x1ee   : > { %v1882_v8 = vsel %vm597_vm1, %v3942_v55, %v1673_v28  ;;  %v951_v5 = vpop.permute.xlu0 %950  ;;  %v1805_v20 = vpop.permute.xlu2 %1804 }
 0x1ef   : > { %v1065_v1 = vsel %vm630_vm2, %v1033_v35, %v951_v5  ;;  %v1914_v57 = vsel %vm630_vm2, %v1882_v8, %v3870_v56  ;;  %2217 = vst [vmem:[%s3868_s12 + $0x10] sm:$0xff] %v2185_v42  ;;  %v1432_v35 = vpop.f32.mrf.mxu1 }
 0x1f0   : > { %2506 = vmatmul.msk.f32.gmra.mxu0 %vm1087_vm3, %v1065_v1 }
 0x1f1   : > { %2671 = vmatmul.msk.f32.gmra.mxu2 %vm1087_vm3, %v1914_v57 }
 0x1f3   : > { %1704 = vrot.lane.b32.xlu1 %v2620_v4, %s2750_s20  ;;  %1816 = vrot.lane.b32.xlu2 %v2644_v11, %s2751_s21  ;;  %v3979_v39 = vpop.f32.mrf.mxu3 }
 0x1f4   : > { %1688 = vrot.lane.b32.xlu0 %v2612_v17, %s2750_s20  ;;  %v1214_v7 = vpop.f32.mrf.mxu0 }
 0x1f5   : > { %v953_v15 = vpop.permute.xlu1 %952  ;;  %v1427_v53 = vadd.f32 %v1426_v38, %v1214_v7 }
 0x1f6   : > { %v825_v56 = vpop.permute.xlu0 %824  ;;  %v957_v50 = vpop.permute.xlu2 %956 }
 0x1f7   : > { %v1034_v27 = vsel %vm597_vm1, %v3885_v9, %v825_v56 }
 0x1f8   : > { %v1066_v0 = vsel %vm630_vm2, %v1034_v27, %v953_v15  ;;  %v2583_v15 = vld [vmem:[%s2796_s19 + $0x158] sm:$0xff] }
 0x1f9   : > { %2507 = vmatmul.msk.f32.gmra.mxu0 %vm1087_vm3, %v1066_v0 }
 0x1fb   : > { %v2060_v21 = vpop.f32.mrf.mxu2  ;;  %840 = vrot.lane.b32.xlu1 %v3850_v32, %s2750_s20  ;;  %968 = vrot.lane.b32.xlu2 %v3847_v54, %s2751_s21  ;;  %v4002_v14 = vpop.f32.mrf.mxu3 }
 0x1fc   : > { %v2150_v9 = vadd.f32 %v2060_v21, %v1427_v53  ;;  %1832 = vrot.lane.b32.xlu0 %v2652_v33, %s2751_s21  ;;  %v1435_v33 = vpop.f32.mrf.mxu1 }
 0x1fd   : > { %v827_v59 = vpop.permute.xlu1 %826 }
 0x1fe   : > { %v2186_v19 = vadd.f32 %v3857_v47, %v2150_v9  ;;  %v1035_v32 = vsel %vm597_vm1, %v2571_v58, %v827_v59  ;;  %v1803_v62 = vpop.permute.xlu0 %1802  ;;  %v1807_v54 = vpop.permute.xlu2 %1806 }
 0x1ff   : > { %v1915_v16 = vsel %vm630_vm2, %v1883_v31, %v1803_v62  ;;  %v1067_v24 = vsel %vm630_vm2, %v1035_v32, %v955_v48  ;;  %v2653_v48 = vld [vmem:[%s2796_s19 + $0x1a2] sm:$0xff] }
 0x200   : > { %2218 = vst [vmem:[%s3868_s12 + $0x18] sm:$0xff] %v2186_v19  ;;  %2672 = vmatmul.msk.f32.gmra.mxu2 %vm1087_vm3, %v1915_v16  ;;  %v4046_v62 = vld [vmem:[%s2796_s19 + $0x108] sm:$0xff] }
 0x201   : > { %2508 = vmatmul.msk.f32.gmra.mxu0 %vm1087_vm3, %v1067_v24 }
 0x203   : > { %1706 = vrot.lane.b32.xlu1 %v2621_v13, %s2750_s20  ;;  %1818 = vrot.lane.b32.xlu2 %v2645_v30, %s2751_s21 }
 0x204   : > { %1690 = vrot.lane.b32.xlu0 %v2613_v2, %s2750_s20  ;;  %v2063_v25 = vpop.f32.mrf.mxu2  ;;  %v1438_v30 = vpop.f32.mrf.mxu1 }
 0x205   : > { %v1217_v22 = vpop.f32.mrf.mxu0  ;;  %v1693_v58 = vpop.permute.xlu1 %1692 }
 0x206   : > { %v1430_v18 = vadd.f32 %v1429_v29, %v1217_v22  ;;  %v1677_v43 = vpop.permute.xlu0 %1676  ;;  %v959_v63 = vpop.permute.xlu2 %958  ;;  %v1892_v52 = vsel %vm597_vm1, %v2582_v60, %v1693_v58  ;;  %v2584_v22 = vld [vmem:[%s2796_s19 + $0x168] sm:$0xff] }
 0x207   : > { %v1884_v49 = vsel %vm597_vm1, %v3998_v51, %v1677_v43 }
 0x208   : > { %v2151_v34 = vadd.f32 %v2063_v25, %v1430_v18  ;;  %v1916_v26 = vsel %vm630_vm2, %v1884_v49, %v1805_v20 }
 0x209   : > { %2673 = vmatmul.msk.f32.gmra.mxu2 %vm1087_vm3, %v1916_v26 }
 0x20a   : > { %v2187_v36 = vadd.f32 %v3857_v47, %v2151_v34 }
 0x20b   : > { %842 = vrot.lane.b32.xlu1 %v3915_v44, %s2750_s20  ;;  %970 = vrot.lane.b32.xlu2 %v3911_v41, %s2751_s21  ;;  %v4020_v41 = vpop.f32.mrf.mxu3 }
 0x20c   : > { %2219 = vst [vmem:[%s3868_s12 + $0x20] sm:$0xff] %v2187_v36  ;;  %1834 = vrot.lane.b32.xlu0 %v2653_v48, %s2751_s21 }
 0x20d   : > { %v829_v12 = vpop.permute.xlu1 %828  ;;  %v1220_v6 = vpop.f32.mrf.mxu0 }
 0x20e   : > { %v1036_v3 = vsel %vm597_vm1, %v3942_v55, %v829_v12  ;;  %v1821_v45 = vpop.permute.xlu0 %1820  ;;  %v1809_v10 = vpop.permute.xlu2 %1808  ;;  %v1433_v42 = vadd.f32 %v1432_v35, %v1220_v6  ;;  %v4025_v55 = vld [vmem:[%s2796_s19 + $0xf8] sm:$0xff] }
 0x20f   : > { %v1924_v28 = vsel %vm630_vm2, %v1892_v52, %v1821_v45  ;;  %v1068_v44 = vsel %vm630_vm2, %v1036_v3, %v957_v50  ;;  %v1441_v52 = vpop.f32.mrf.mxu1  ;;  %v4069_v3 = vld [vmem:[%s2796_s19 + $0x110] sm:$0xff] }
 0x210   : > { %2681 = vmatmul.msk.f32.vlgmr.msra.gmra.mxu3 %vm1087_vm3, %v1924_v28  ;;  %2509 = vmatmul.msk.f32.gmra.mxu0 %vm1087_vm3, %v1068_v44 }
 0x212   : > { %v2066_v8 = vpop.f32.mrf.mxu2 }
 0x213   : > { %v2152_v5 = vadd.f32 %v2066_v8, %v1433_v42  ;;  %v4030_v17 = vpop.f32.mrf.mxu3 }
 0x215   : > { %v1695_v20 = vpop.permute.xlu1 %1694  ;;  %v2188_v1 = vadd.f32 %v3857_v47, %v2152_v5 }
 0x216   : > { %v1679_v4 = vpop.permute.xlu0 %1678  ;;  %v961_v57 = vpop.permute.xlu2 %960  ;;  %v1893_v50 = vsel %vm597_vm1, %v2583_v15, %v1695_v20 }
 0x217   : > { %v1885_v11 = vsel %vm597_vm1, %v4025_v55, %v1679_v4  ;;  %2220 = vst [vmem:[%s3868_s12 + $0x28] sm:$0xff] %v2188_v1  ;;  %v2585_v1 = vld [vmem:[%s2796_s19 + $0x170] sm:$0xff] }
 0x218   : > { %v1917_v7 = vsel %vm630_vm2, %v1885_v11, %v1807_v54 }
 0x219   : > { %2674 = vmatmul.msk.f32.gmra.mxu2 %vm1087_vm3, %v1917_v7 }
 0x21c   : > { %v1223_v27 = vpop.f32.mrf.mxu0  ;;  %v4043_v59 = vpop.f32.mrf.mxu3 }
 0x21d   : > { %v831_v56 = vpop.permute.xlu1 %830  ;;  %v1436_v19 = vadd.f32 %v1435_v33, %v1223_v27 }
 0x21e   : > { %v1037_v38 = vsel %vm597_vm1, %v3976_v61, %v831_v56  ;;  %v1823_v0 = vpop.permute.xlu0 %1822  ;;  %v1811_v9 = vpop.permute.xlu2 %1810 }
 0x21f   : > { %v1925_v53 = vsel %vm630_vm2, %v1893_v50, %v1823_v0  ;;  %v1069_v21 = vsel %vm630_vm2, %v1037_v38, %v959_v63  ;;  %v1444_v38 = vpop.f32.mrf.mxu1 }
 0x220   : > { %2682 = vmatmul.msk.f32.gmra.mxu3 %vm1087_vm3, %v1925_v53  ;;  %2510 = vmatmul.msk.f32.gmra.mxu0 %vm1087_vm3, %v1069_v21 }
 0x223   : > { %v2069_v31 = vpop.f32.mrf.mxu2 }
 0x224   : > { %v2153_v32 = vadd.f32 %v2069_v31, %v1436_v19 }
 0x225   : > { %v1697_v54 = vpop.permute.xlu1 %1696 }
 0x226   : > { %v2189_v61 = vadd.f32 %v3857_v47, %v2153_v32  ;;  %v1681_v16 = vpop.permute.xlu0 %1680  ;;  %v963_v29 = vpop.permute.xlu2 %962  ;;  %v1894_v63 = vsel %vm597_vm1, %v2584_v22, %v1697_v54 }
 0x227   : > { %v1886_v24 = vsel %vm597_vm1, %v4046_v62, %v1681_v16  ;;  %v1447_v16 = vpop.f32.mrf.mxu1 }
 0x228   : > { %2221 = vst [vmem:[%s3868_s12 + $0x30] sm:$0xff] %v2189_v61  ;;  %v1918_v13 = vsel %vm630_vm2, %v1886_v24, %v1809_v10 }
 0x229   : > { %2675 = vmatmul.msk.f32.gmra.mxu2 %vm1087_vm3, %v1918_v13 }
 0x22a   : > { %v4054_v2 = vpop.f32.mrf.mxu3 }
 0x22c   : > { %v2072_v25 = vpop.f32.mrf.mxu2 }
 0x22d   : > { %v1226_v18 = vpop.f32.mrf.mxu0  ;;  %v833_v43 = vpop.permute.xlu1 %832 }
 0x22e   : > { %v1439_v58 = vadd.f32 %v1438_v30, %v1226_v18  ;;  %v1038_v34 = vsel %vm597_vm1, %v3998_v51, %v833_v43  ;;  %v1825_v49 = vpop.permute.xlu0 %1824  ;;  %v1813_v45 = vpop.permute.xlu2 %1812 }
 0x22f   : > { %v1926_v48 = vsel %vm630_vm2, %v1894_v63, %v1825_v49  ;;  %v1070_v36 = vsel %vm630_vm2, %v1038_v34, %v961_v57 }
 0x230   : > { %v2154_v26 = vadd.f32 %v2072_v25, %v1439_v58  ;;  %2683 = vmatmul.msk.f32.gmra.mxu3 %vm1087_vm3, %v1926_v48  ;;  %2511 = vmatmul.msk.f32.gmra.mxu0 %vm1087_vm3, %v1070_v36  ;;  %v1450_v48 = vpop.f32.mrf.mxu1  ;;  %v4113_v36 = vld [vmem:[%s2796_s19 + $0x128] sm:$0xff] }
 0x232   : > { %v2190_v60 = vadd.f32 %v3857_v47, %v2154_v26  ;;  %v4065_v12 = vpop.f32.mrf.mxu3 }
 0x234   : > { %2222 = vst [vmem:[%s3868_s12 + $0x38] sm:$0xff] %v2190_v60  ;;  %v2075_v51 = vpop.f32.mrf.mxu2 }
 0x235   : > { %v1699_v10 = vpop.permute.xlu1 %1698 }
 0x236   : > { %v1229_v6 = vpop.f32.mrf.mxu0  ;;  %v1683_v44 = vpop.permute.xlu0 %1682  ;;  %v1895_v57 = vsel %vm597_vm1, %v2585_v1, %v1699_v10 }
 0x237   : > { %v1442_v28 = vadd.f32 %v1441_v52, %v1229_v6  ;;  %v1887_v35 = vsel %vm597_vm1, %v4069_v3, %v1683_v44  ;;  %v965_v27 = vpop.permute.xlu2 %964 }
 0x238   : > { %v1919_v8 = vsel %vm630_vm2, %v1887_v35, %v1811_v9  ;;  %v4090_v9 = vld [vmem:[%s2796_s19 + $0x120] sm:$0xff] }
 0x239   : > { %v2155_v42 = vadd.f32 %v2075_v51, %v1442_v28  ;;  %2676 = vmatmul.msk.f32.gmra.mxu2 %vm1087_vm3, %v1919_v8 }
 0x23a   : > { %v4076_v20 = vpop.f32.mrf.mxu3 }
 0x23b   : > { %v2191_v5 = vadd.f32 %v3857_v47, %v2155_v42 }
 0x23d   : > { %2223 = vst [vmem:[%s3868_s12 + $0x40] sm:$0xff] %v2191_v5  ;;  %v835_v4 = vpop.permute.xlu1 %834 }
 0x23e   : > { %v1039_v11 = vsel %vm597_vm1, %v4025_v55, %v835_v4  ;;  %v1232_v7 = vpop.f32.mrf.mxu0  ;;  %v1827_v15 = vpop.permute.xlu0 %1826 }
 0x23f   : > { %v1927_v56 = vsel %vm630_vm2, %v1895_v57, %v1827_v15  ;;  %v1071_v50 = vsel %vm630_vm2, %v1039_v11, %v963_v29  ;;  %v1445_v0 = vadd.f32 %v1444_v38, %v1232_v7  ;;  %v1815_v54 = vpop.permute.xlu2 %1814  ;;  %v2580_v38 = vld [vmem:[%s2796_s19 + $0x138] sm:$0xff] }
 0x240   : > { %2684 = vmatmul.msk.f32.gmra.mxu3 %vm1087_vm3, %v1927_v56  ;;  %2512 = vmatmul.msk.f32.gmra.mxu0 %vm1087_vm3, %v1071_v50  ;;  %v1453_v56 = vpop.f32.mrf.mxu1 }
 0x242   : > { %v4087_v33 = vpop.f32.mrf.mxu3 }
 0x243   : > { %v2078_v53 = vpop.f32.mrf.mxu2 }
 0x244   : > { %v2156_v21 = vadd.f32 %v2078_v53, %v1445_v0 }
 0x245   : > { %v1701_v19 = vpop.permute.xlu1 %1700 }
 0x246   : > { %v2192_v55 = vadd.f32 %v3857_v47, %v2156_v21  ;;  %v1685_v31 = vpop.permute.xlu0 %1684  ;;  %v1896_v25 = vsel %vm597_vm1, %v3677_v46, %v1701_v19 }
 0x247   : > { %v1888_v32 = vsel %vm597_vm1, %v4090_v9, %v1685_v31  ;;  %v967_v46 = vpop.permute.xlu2 %966 }
 0x248   : > { %2224 = vst [vmem:[%s3868_s12 + $0x48] sm:$0xff] %v2192_v55  ;;  %v1920_v61 = vsel %vm630_vm2, %v1888_v32, %v1813_v45  ;;  %v1456_v32 = vpop.f32.mrf.mxu1 }
 0x249   : > { %2677 = vmatmul.msk.f32.gmra.mxu2 %vm1087_vm3, %v1920_v61 }
 0x24a   : > { %v4098_v24 = vpop.f32.mrf.mxu3 }
 0x24c   : > { %v2081_v13 = vpop.f32.mrf.mxu2 }
 0x24d   : > { %v1235_v30 = vpop.f32.mrf.mxu0  ;;  %v837_v22 = vpop.permute.xlu1 %836 }
 0x24e   : > { %v1448_v29 = vadd.f32 %v1447_v16, %v1235_v30  ;;  %v1040_v18 = vsel %vm597_vm1, %v4046_v62, %v837_v22  ;;  %v1829_v58 = vpop.permute.xlu0 %1828 }
 0x24f   : > { %v1928_v63 = vsel %vm630_vm2, %v1896_v25, %v1829_v58  ;;  %v1072_v34 = vsel %vm630_vm2, %v1040_v18, %v965_v27  ;;  %v1817_v5 = vpop.permute.xlu2 %1816 }
 0x250   : > { %v2157_v43 = vadd.f32 %v2081_v13, %v1448_v29  ;;  %2685 = vmatmul.msk.f32.gmra.mxu3 %vm1087_vm3, %v1928_v63  ;;  %2513 = vmatmul.msk.f32.gmra.mxu0 %vm1087_vm3, %v1072_v34 }
 0x252   : > { %v2193_v49 = vadd.f32 %v3857_v47, %v2157_v43  ;;  %v4109_v26 = vpop.f32.mrf.mxu3 }
 0x254   : > { %2225 = vst [vmem:[%s3868_s12 + $0x50] sm:$0xff] %v2193_v49  ;;  %v2084_v62 = vpop.f32.mrf.mxu2  ;;  %v1459_v49 = vpop.f32.mrf.mxu1 }
 0x255   : > { %v1703_v60 = vpop.permute.xlu1 %1702 }
 0x256   : > { %v1238_v52 = vpop.f32.mrf.mxu0  ;;  %v1687_v45 = vpop.permute.xlu0 %1686  ;;  %v1897_v1 = vsel %vm597_vm1, %v3708_v40, %v1703_v60 }
 0x257   : > { %v1451_v51 = vadd.f32 %v1450_v48, %v1238_v52  ;;  %v1889_v10 = vsel %vm597_vm1, %v4113_v36, %v1687_v45  ;;  %v969_v31 = vpop.permute.xlu2 %968 }
 0x258   : > { %v1921_v28 = vsel %vm630_vm2, %v1889_v10, %v1815_v54  ;;  %v2588_v54 = vld [vmem:[%s2796_s19 + $0x198] sm:$0xff] }
 0x259   : > { %v2158_v6 = vadd.f32 %v2084_v62, %v1451_v51  ;;  %2678 = vmatmul.msk.f32.gmra.mxu2 %vm1087_vm3, %v1921_v28 }
 0x25a   : > { %v1504_v35 = vpop.f32.mrf.mxu3 }
 0x25b   : > { %v2194_v44 = vadd.f32 %v3857_v47, %v2158_v6  ;;  %v4121_v42 = vadd.f32 %v1504_v35, %v4030_v17  ;;  %v2589_v6 = vld [vmem:[%s2796_s19 + $0x1a0] sm:$0xff] }
 0x25d   : > { %2226 = vst [vmem:[%s3868_s12 + $0x58] sm:$0xff] %v2194_v44  ;;  %v839_v8 = vpop.permute.xlu1 %838 }
 0x25e   : > { %v1041_v4 = vsel %vm597_vm1, %v4069_v3, %v839_v8  ;;  %v1241_v57 = vpop.f32.mrf.mxu0  ;;  %v1831_v11 = vpop.permute.xlu0 %1830 }
 0x25f   : > { %v1929_v7 = vsel %vm630_vm2, %v1897_v1, %v1831_v11  ;;  %v1073_v15 = vsel %vm630_vm2, %v1041_v4, %v967_v46  ;;  %v1454_v17 = vadd.f32 %v1453_v56, %v1241_v57  ;;  %v1819_v34 = vpop.permute.xlu2 %1818  ;;  %v2581_v46 = vld [vmem:[%s2796_s19 + $0x140] sm:$0xff] }
 0x260   : > { %2686 = vmatmul.msk.f32.gmra.mxu3 %vm1087_vm3, %v1929_v7  ;;  %2514 = vmatmul.msk.f32.gmra.mxu0 %vm1087_vm3, %v1073_v15  ;;  %v1462_v7 = vpop.f32.mrf.mxu1 }
 0x262   : > { %v1507_v50 = vpop.f32.mrf.mxu3 }
 0x263   : > { %v2087_v27 = vpop.f32.mrf.mxu2  ;;  %v4133_v40 = vadd.f32 %v1507_v50, %v4043_v59 }
 0x264   : > { %v2159_v3 = vadd.f32 %v2087_v27, %v1454_v17 }
 0x265   : > { %v1705_v53 = vpop.permute.xlu1 %1704 }
 0x266   : > { %v2195_v0 = vadd.f32 %v3857_v47, %v2159_v3  ;;  %v1689_v21 = vpop.permute.xlu0 %1688  ;;  %v1898_v29 = vsel %vm597_vm1, %v2588_v54, %v1705_v53  ;;  %v1490_v53 = vadd.f32 %v4065_v12, %v3944_v37 }
 0x267   : > { %v1890_v55 = vsel %vm597_vm1, %v2580_v38, %v1689_v21  ;;  %v971_v44 = vpop.permute.xlu2 %970 }
 0x268   : > { %2227 = vst [vmem:[%s3868_s12 + $0x60] sm:$0xff] %v2195_v0  ;;  %v1922_v19 = vsel %vm630_vm2, %v1890_v55, %v1817_v5 }
 0x269   : > { %2679 = vmatmul.msk.f32.gmra.mxu2 %vm1087_vm3, %v1922_v19 }
 0x26a   : > { %v1510_v61 = vpop.f32.mrf.mxu3 }
 0x26b   : > { %v4143_v59 = vadd.f32 %v1510_v61, %v4054_v2 }
 0x26c   : > { %v2090_v16 = vpop.f32.mrf.mxu2 }
 0x26d   : > { %v1244_v13 = vpop.f32.mrf.mxu0  ;;  %v841_v30 = vpop.permute.xlu1 %840 }
 0x26e   : > { %v1457_v22 = vadd.f32 %v1456_v32, %v1244_v13  ;;  %v1042_v25 = vsel %vm597_vm1, %v4090_v9, %v841_v30  ;;  %v1833_v18 = vpop.permute.xlu0 %1832  ;;  %v1493_v30 = vadd.f32 %v4076_v20, %v3964_v23 }
 0x26f   : > { %v1930_v58 = vsel %vm630_vm2, %v1898_v29, %v1833_v18  ;;  %v1074_v43 = vsel %vm630_vm2, %v1042_v25, %v969_v31 }
 0x270   : > { %v2160_v63 = vadd.f32 %v2090_v16, %v1457_v22  ;;  %2687 = vmatmul.msk.f32.gmra.mxu3 %vm1087_vm3, %v1930_v58  ;;  %2515 = vmatmul.msk.f32.gmra.mxu0 %vm1087_vm3, %v1074_v43 }
 0x272   : > { %v2196_v2 = vadd.f32 %v3857_v47, %v2160_v63 }
 0x274   : > { %2228 = vst [vmem:[%s3868_s12 + $0x68] sm:$0xff] %v2196_v2  ;;  %v2093_v9 = vpop.f32.mrf.mxu2  ;;  %v1496_v2 = vadd.f32 %v4087_v33, %v3979_v39 }
 0x275   : > { %v1707_v48 = vpop.permute.xlu1 %1706 }
 0x276   : > { %v1247_v62 = vpop.f32.mrf.mxu0  ;;  %v1691_v60 = vpop.permute.xlu0 %1690  ;;  %v1899_v8 = vsel %vm597_vm1, %v2589_v6, %v1707_v48 }
 0x277   : > { %v1460_v52 = vadd.f32 %v1459_v49, %v1247_v62  ;;  %v1891_v51 = vsel %vm597_vm1, %v2581_v46, %v1691_v60 }
 0x278   : > { %v1923_v45 = vsel %vm630_vm2, %v1891_v51, %v1819_v34 }
 0x279   : > { %v2161_v10 = vadd.f32 %v2093_v9, %v1460_v52  ;;  %2680 = vmatmul.msk.f32.gmra.mxu2 %vm1087_vm3, %v1923_v45  ;;  %v1499_v52 = vadd.f32 %v4098_v24, %v4002_v14 }
 0x27b   : > { %v2197_v28 = vadd.f32 %v3857_v47, %v2161_v10 }
 0x27d   : > { %2229 = vst [vmem:[%s3868_s12 + $0x70] sm:$0xff] %v2197_v28  ;;  %v843_v35 = vpop.permute.xlu1 %842 }
 0x27e   : > { %v1043_v5 = vsel %vm597_vm1, %v4113_v36, %v843_v35  ;;  %v1835_v1 = vpop.permute.xlu0 %1834  ;;  %v1250_v4 = vpop.f32.mrf.mxu0 }
 0x27f   : > { %v1931_v57 = vsel %vm630_vm2, %v1899_v8, %v1835_v1  ;;  %v1075_v11 = vsel %vm630_vm2, %v1043_v5, %v971_v44  ;;  %v1463_v15 = vadd.f32 %v1462_v7, %v1250_v4  ;;  %v1465_v36 = vpop.f32.mrf.mxu1  ;;  %v1502_v8 = vadd.f32 %v4109_v26, %v4020_v41 }
 0x280   : > { %2688 = vmatmul.msk.f32.gmra.mxu3 %vm1087_vm3, %v1931_v57  ;;  %2516 = vmatmul.msk.f32.gmra.mxu0 %vm1087_vm3, %v1075_v11 }
 0x283   : > { %v2096_v56 = vpop.f32.mrf.mxu2 }
 0x284   : > { %v2162_v17 = vadd.f32 %v2096_v56, %v1463_v15 }
 0x286   : > { %v2198_v50 = vadd.f32 %v3857_v47, %v2162_v17 }
 0x287   : > { %v1468_v32 = vpop.f32.mrf.mxu1 }
 0x288   : > { %2230 = vst [vmem:[%s3868_s12 + $0x78] sm:$0xff] %v2198_v50 }
 0x28c   : > { %v2099_v38 = vpop.f32.mrf.mxu2 }
 0x28d   : > { %v1253_v27 = vpop.f32.mrf.mxu0 }
 0x28e   : > { %v1466_v3 = vadd.f32 %v1465_v36, %v1253_v27 }
 0x28f   : > { %v1471_v25 = vpop.f32.mrf.mxu1 }
 0x290   : > { %v2163_v0 = vadd.f32 %v2099_v38, %v1466_v3 }
 0x292   : > { %v2199_v21 = vadd.f32 %v3857_v47, %v2163_v0 }
 0x293   : > { %v2123_v55 = vpop.f32.mrf.mxu3 }
 0x294   : > { %2231 = vst [vmem:[%s3868_s12 + $0x80] sm:$0xff] %v2199_v21  ;;  %v2171_v19 = vadd.f32 %v2123_v55, %v1490_v53 }
 0x296   : > { %v2207_v31 = vadd.f32 %v3857_v47, %v2171_v19 }
 0x297   : > { %v1474_v46 = vpop.f32.mrf.mxu1 }
 0x298   : > { %2239 = vst [vmem:[%s3868_s12 + $0xc0] sm:$0xff] %v2207_v31 }
 0x29c   : > { %v2102_v16 = vpop.f32.mrf.mxu2 }
 0x29d   : > { %v1256_v61 = vpop.f32.mrf.mxu0 }
 0x29e   : > { %v1469_v54 = vadd.f32 %v1468_v32, %v1256_v61 }
 0x29f   : > { %v1477_v10 = vpop.f32.mrf.mxu1 }
 0x2a0   : > { %v2164_v13 = vadd.f32 %v2102_v16, %v1469_v54 }
 0x2a2   : > { %v2200_v37 = vadd.f32 %v3857_v47, %v2164_v13 }
 0x2a3   : > { %v2126_v12 = vpop.f32.mrf.mxu3 }
 0x2a4   : > { %2232 = vst [vmem:[%s3868_s12 + $0x88] sm:$0xff] %v2200_v37  ;;  %v2172_v29 = vadd.f32 %v2126_v12, %v1493_v30 }
 0x2a6   : > { %v2208_v22 = vadd.f32 %v3857_v47, %v2172_v29 }
 0x2a7   : > { %v1480_v4 = vpop.f32.mrf.mxu1 }
 0x2a8   : > { %2240 = vst [vmem:[%s3868_s12 + $0xc8] sm:$0xff] %v2208_v22 }
 0x2ac   : > { %v2105_v43 = vpop.f32.mrf.mxu2 }
 0x2ad   : > { %v1259_v18 = vpop.f32.mrf.mxu0 }
 0x2ae   : > { %v1472_v58 = vadd.f32 %v1471_v25, %v1259_v18 }
 0x2af   : > { %v1483_v50 = vpop.f32.mrf.mxu1 }
 0x2b0   : > { %v2165_v63 = vadd.f32 %v2105_v43, %v1472_v58 }
 0x2b2   : > { %v2201_v23 = vadd.f32 %v3857_v47, %v2165_v63 }
 0x2b3   : > { %v2129_v20 = vpop.f32.mrf.mxu3 }
 0x2b4   : > { %2233 = vst [vmem:[%s3868_s12 + $0x90] sm:$0xff] %v2201_v23  ;;  %v2173_v34 = vadd.f32 %v2129_v20, %v1496_v2 }
 0x2b6   : > { %v2209_v49 = vadd.f32 %v3857_v47, %v2173_v34 }
 0x2b8   : > { %2241 = vst [vmem:[%s3868_s12 + $0xd0] sm:$0xff] %v2209_v49 }
 0x2bc   : > { %v2108_v62 = vpop.f32.mrf.mxu2 }
 0x2bd   : > { %v1262_v48 = vpop.f32.mrf.mxu0 }
 0x2be   : > { %v1475_v9 = vadd.f32 %v1474_v46, %v1262_v48 }
 0x2c0   : > { %v2166_v60 = vadd.f32 %v2108_v62, %v1475_v9 }
 0x2c2   : > { %v2202_v39 = vadd.f32 %v3857_v47, %v2166_v60 }
 0x2c3   : > { %v2132_v33 = vpop.f32.mrf.mxu3 }
 0x2c4   : > { %2234 = vst [vmem:[%s3868_s12 + $0x98] sm:$0xff] %v2202_v39  ;;  %v2174_v51 = vadd.f32 %v2132_v33, %v1499_v52 }
 0x2c6   : > { %v2210_v45 = vadd.f32 %v3857_v47, %v2174_v51 }
 0x2c8   : > { %2242 = vst [vmem:[%s3868_s12 + $0xd8] sm:$0xff] %v2210_v45 }
 0x2cc   : > { %v2111_v44 = vpop.f32.mrf.mxu2 }
 0x2cd   : > { %v1265_v6 = vpop.f32.mrf.mxu0 }
 0x2ce   : > { %v1478_v28 = vadd.f32 %v1477_v10, %v1265_v6 }
 0x2d0   : > { %v2167_v35 = vadd.f32 %v2111_v44, %v1478_v28 }
 0x2d2   : > { %v2203_v14 = vadd.f32 %v3857_v47, %v2167_v35 }
 0x2d3   : > { %v2135_v24 = vpop.f32.mrf.mxu3 }
 0x2d4   : > { %2235 = vst [vmem:[%s3868_s12 + $0xa0] sm:$0xff] %v2203_v14  ;;  %v2175_v5 = vadd.f32 %v2135_v24, %v1502_v8 }
 0x2d6   : > { %v2211_v1 = vadd.f32 %v3857_v47, %v2175_v5 }
 0x2d8   : > { %2243 = vst [vmem:[%s3868_s12 + $0xe0] sm:$0xff] %v2211_v1 }
 0x2dc   : > { %v2114_v7 = vpop.f32.mrf.mxu2 }
 0x2dd   : > { %v1268_v57 = vpop.f32.mrf.mxu0 }
 0x2de   : > { %v1481_v11 = vadd.f32 %v1480_v4, %v1268_v57 }
 0x2e0   : > { %v2168_v15 = vadd.f32 %v2114_v7, %v1481_v11 }
 0x2e2   : > { %v2204_v56 = vadd.f32 %v3857_v47, %v2168_v15 }
 0x2e3   : > { %v2138_v17 = vpop.f32.mrf.mxu3 }
 0x2e4   : > { %2236 = vst [vmem:[%s3868_s12 + $0xa8] sm:$0xff] %v2204_v56  ;;  %v2176_v41 = vadd.f32 %v2138_v17, %v4121_v42  ;;  %v1486_v42 = vpop.f32.mrf.mxu1 }
 0x2e6   : > { %v2212_v26 = vadd.f32 %v3857_v47, %v2176_v41 }
 0x2e8   : > { %2244 = vst [vmem:[%s3868_s12 + $0xe8] sm:$0xff] %v2212_v26 }
 0x2ec   : > { %v2117_v3 = vpop.f32.mrf.mxu2 }
 0x2ed   : > { %v1271_v36 = vpop.f32.mrf.mxu0 }
 0x2ee   : > { %v1484_v27 = vadd.f32 %v1483_v50, %v1271_v36 }
 0x2f0   : > { %v2169_v38 = vadd.f32 %v2117_v3, %v1484_v27 }
 0x2f2   : > { %v2205_v0 = vadd.f32 %v3857_v47, %v2169_v38 }
 0x2f3   : > { %v2141_v53 = vpop.f32.mrf.mxu3 }
 0x2f4   : > { %2237 = vst [vmem:[%s3868_s12 + $0xb0] sm:$0xff] %v2205_v0  ;;  %v2177_v21 = vadd.f32 %v2141_v53, %v4133_v40 }
 0x2f6   : > { %v2213_v55 = vadd.f32 %v3857_v47, %v2177_v21 }
 0x2f8   : > { %2245 = vst [vmem:[%s3868_s12 + $0xf0] sm:$0xff] %v2213_v55 }
 0x2fc   : > { %v2120_v32 = vpop.f32.mrf.mxu2 }
 0x2fd   : > { %v1274_v19 = vpop.f32.mrf.mxu0 }
 0x2fe   : > { %v1487_v31 = vadd.f32 %v1486_v42, %v1274_v19 }
 0x300   : > { %v2170_v61 = vadd.f32 %v2120_v32, %v1487_v31 }
 0x302   : > { %v2206_v54 = vadd.f32 %v3857_v47, %v2170_v61 }
 0x303   : > { %v2144_v16 = vpop.f32.mrf.mxu3 }
 0x304   : > { %2238 = vst [vmem:[%s3868_s12 + $0xb8] sm:$0xff] %v2206_v54  ;;  %v2178_v13 = vadd.f32 %v2144_v16, %v4143_v59 }
 0x306   : > { %v2214_v30 = vadd.f32 %v3857_v47, %v2178_v13 }
 0x308   : > { %2246 = vst [vmem:[%s3868_s12 + $0xf8] sm:$0xff] %v2214_v30 }
 0x309 PF: > { %s13_s14 = sadd.s32 1, %s2748_s14   ;;  %s4301_s12 = smov %s2744_s13 }
 0x30a   : > { %p10_p5 = scmp.ge.s32.totalorder %s13_s14, 4   ;;  %s4302_s13 = smov %s4304_s15 }
 0x30c   :  { %12 = sbr.rel (!%p10_p5) target bundleno = 2 (0x2), region = 73 }

</bundles_post_ra>
